<compile_context>
chip_gen: v7x
topology: tpu7x:2x2x1
jax: 0.10.0
libtpu: 0.0.40
codegen_flags: <defaults>
</compile_context>

<pallas_src>
import functools

import jax
import jax.numpy as jnp
from jax import lax
from jax.experimental import pallas as pl
from jax.experimental.pallas import tpu as pltpu

INPUT_SIZE = 34
HIDDEN = 64
NUM_CLASSES = 2
GATES = 4 * HIDDEN          # 256, PyTorch gate order [i | f | g | o]
FC_PAD = 128                # lane-dense padded width of the fc output


def _round_up(v, m):
    return (v + m - 1) // m * m


def _lstm_fc_kernel(x_ref,          # (Tc*Bt, 34)   bf16, rows ordered (t, b) within chunk
                    wih0_ref,       # (34, 256)     bf16
                    whh0_ref,       # (64, 256)     bf16
                    b0_ref,         # (1, 256)      f32   (b_ih0 + b_hh0)
                    wih1_ref,       # (64, 256)     bf16
                    whh1_ref,       # (64, 256)     bf16
                    b1_ref,         # (1, 256)      f32   (b_ih1 + b_hh1)
                    wfc_ref,        # (64, 128)     f32   (columns >= 2 are zero)
                    bfc_ref,        # (1, 128)      f32
                    out_ref,        # (Bt, 128)     f32
                    g_ref,          # scratch (Tc*Bt, 256) f32 - reused gate slab
                    h0all_ref,      # scratch (Tc*Bt, 64)  f32 - layer-0 outputs of chunk
                    h0_ref, c0_ref, h1_ref, c1_ref,   # scratch (Bt, 64) f32 carry
                    *, seq_len, time_chunk, need_time_mask):
    H = HIDDEN
    Bt = h0_ref.shape[0]
    Tc = time_chunk
    t_chunk = pl.program_id(1)

    # (Re)initialize the recurrent state at the first time chunk of each batch tile.
    @pl.when(t_chunk == 0)
    def _():
        h0_ref[...] = jnp.zeros_like(h0_ref)
        c0_ref[...] = jnp.zeros_like(c0_ref)
        h1_ref[...] = jnp.zeros_like(h1_ref)
        c1_ref[...] = jnp.zeros_like(c1_ref)

    whh0 = whh0_ref[...]
    whh1 = whh1_ref[...]

    def gates_to_hc(gates, c):
        # PyTorch gate order [i | f | g | o]; one sigmoid pass over the full
        # 128-lane [i | f] half, then tanh / sigmoid on the remaining halves.
        if_act = jax.nn.sigmoid(gates[:, :2 * H])
        i = if_act[:, :H]
        f = if_act[:, H:]
        g = jnp.tanh(gates[:, 2 * H:3 * H])
        o = jax.nn.sigmoid(gates[:, 3 * H:])
        c_new = f * c + i * g
        h_new = o * jnp.tanh(c_new)
        return h_new, c_new

    def valid_at(t):
        return (t_chunk * Tc + t) < seq_len

    # Hoisted layer-0 input projection: one big MXU matmul for the whole chunk,
    # removed from the serial T-step dependency chain.
    g_ref[...] = (jnp.dot(x_ref[...], wih0_ref[...],
                          preferred_element_type=jnp.float32) + b0_ref[...])

    # ---- layer-0 recurrence over the chunk (one K=64 matmul per step) ----
    def step0(t, carry):
        h0, c0 = carry
        g0 = g_ref[pl.ds(t * Bt, Bt), :] + jnp.dot(
            h0.astype(jnp.bfloat16), whh0, preferred_element_type=jnp.float32)
        h0n, c0n = gates_to_hc(g0, c0)
        if need_time_mask:
            v = valid_at(t)
            h0n = jnp.where(v, h0n, h0)
            c0n = jnp.where(v, c0n, c0)
        h0all_ref[pl.ds(t * Bt, Bt), :] = h0n
        return (h0n, c0n)

    h0, c0 = lax.fori_loop(0, Tc, step0, (h0_ref[...], c0_ref[...]), unroll=True)
    h0_ref[...] = h0
    c0_ref[...] = c0

    # Hoisted layer-1 input projection for the whole chunk (reuses the gate slab;
    # layer-0 gates were fully consumed above).
    g_ref[...] = (jnp.dot(h0all_ref[...].astype(jnp.bfloat16), wih1_ref[...],
                          preferred_element_type=jnp.float32) + b1_ref[...])

    # ---- layer-1 recurrence over the chunk (one K=64 matmul per step) ----
    def step1(t, carry):
        h1, c1 = carry
        g1 = g_ref[pl.ds(t * Bt, Bt), :] + jnp.dot(
            h1.astype(jnp.bfloat16), whh1, preferred_element_type=jnp.float32)
        h1n, c1n = gates_to_hc(g1, c1)
        if need_time_mask:
            v = valid_at(t)
            h1n = jnp.where(v, h1n, h1)
            c1n = jnp.where(v, c1n, c1)
        return (h1n, c1n)

    h1, c1 = lax.fori_loop(0, Tc, step1, (h1_ref[...], c1_ref[...]), unroll=True)
    h1_ref[...] = h1
    c1_ref[...] = c1

    # FC on the last hidden state of the top layer, written lane-dense.
    @pl.when(t_chunk == pl.num_programs(1) - 1)
    def _():
        out_ref[...] = (jnp.dot(h1, wfc_ref[...],
                                preferred_element_type=jnp.float32)
                        + bfc_ref[...]).astype(out_ref.dtype)


def accident_lstm_forward(x, kparams, *, time_chunk=16):
    """x: (B, T, 34) batch-first f32, like the PyTorch module. Returns (B, 2)."""
    B, T, D = x.shape
    assert D == INPUT_SIZE

    # Batch tiling: pad to a sublane multiple; tile at 128 rows for large B so
    # the ("parallel") batch axis can be sharded across TensorCores.
    if B <= 128:
        Bt = _round_up(B, 8)
        Bp = Bt
    else:
        Bt = 128
        Bp = _round_up(B, Bt)
    Tc = min(time_chunk, T)
    Tp = _round_up(T, Tc)
    n_bt = Bp // Bt
    n_tc = Tp // Tc

    # (B, T, D) -> padded (n_bt, n_tc, Tc, Bt, D) -> flat 2D rows so each grid
    # step's x block is already the dense (Tc*Bt, 34) matrix the hoisted
    # input-projection matmul consumes (no in-kernel reshape/transpose needed).
    xp = jnp.pad(x, ((0, Bp - B), (0, Tp - T), (0, 0))).astype(jnp.bfloat16)
    xr = xp.reshape(n_bt, Bt, n_tc, Tc, D).transpose(0, 2, 3, 1, 4)
    x2d = xr.reshape(n_bt * n_tc * Tc * Bt, D)

    kernel = functools.partial(
        _lstm_fc_kernel, seq_len=T, time_chunk=Tc, need_time_mask=(Tp != T))

    out_padded = pl.pallas_call(
        kernel,
        out_shape=jax.ShapeDtypeStruct((Bp, FC_PAD), jnp.float32),
        grid_spec=pltpu.PrefetchScalarGridSpec(
            num_scalar_prefetch=0,
            grid=(n_bt, n_tc),
            in_specs=[
                pl.BlockSpec((Tc * Bt, INPUT_SIZE),
                             lambda b, t: (b * n_tc + t, 0)),
                pl.BlockSpec((INPUT_SIZE, GATES), lambda b, t: (0, 0)),
                pl.BlockSpec((HIDDEN, GATES), lambda b, t: (0, 0)),
                pl.BlockSpec((1, GATES), lambda b, t: (0, 0)),
                pl.BlockSpec((HIDDEN, GATES), lambda b, t: (0, 0)),
                pl.BlockSpec((HIDDEN, GATES), lambda b, t: (0, 0)),
                pl.BlockSpec((1, GATES), lambda b, t: (0, 0)),
                pl.BlockSpec((HIDDEN, FC_PAD), lambda b, t: (0, 0)),
                pl.BlockSpec((1, FC_PAD), lambda b, t: (0, 0)),
            ],
            out_specs=pl.BlockSpec((Bt, FC_PAD), lambda b, t: (b, 0)),
            scratch_shapes=[
                pltpu.VMEM((Tc * Bt, GATES), jnp.float32),   # reused gate slab
                pltpu.VMEM((Tc * Bt, HIDDEN), jnp.float32),  # layer-0 chunk outputs
                pltpu.VMEM((Bt, HIDDEN), jnp.float32),       # h0
                pltpu.VMEM((Bt, HIDDEN), jnp.float32),       # c0
                pltpu.VMEM((Bt, HIDDEN), jnp.float32),       # h1
                pltpu.VMEM((Bt, HIDDEN), jnp.float32),       # c1
            ]),
        compiler_params=pltpu.CompilerParams(
            dimension_semantics=("parallel", "arbitrary"),
            vmem_limit_bytes=32 * 1024 * 1024),
    )(x2d,
      kparams["wih0"], kparams["whh0"], kparams["b0"],
      kparams["wih1"], kparams["whh1"], kparams["b1"],
      kparams["wfc"], kparams["bfc"])

    return out_padded[:B, :NUM_CLASSES]


def init_params(key):
    """Canonical PyTorch-shaped float32 parameters (nn.LSTM + nn.Linear init)."""
    H = HIDDEN
    k = 1.0 / jnp.sqrt(jnp.float32(H))
    keys = jax.random.split(key, 10)

    def u(kk, shape):
        return jax.random.uniform(kk, shape, jnp.float32, -k, k)

    return {
        "wih0": u(keys[0], (4 * H, INPUT_SIZE)), "whh0": u(keys[1], (4 * H, H)),
        "bih0": u(keys[2], (4 * H,)), "bhh0": u(keys[3], (4 * H,)),
        "wih1": u(keys[4], (4 * H, H)), "whh1": u(keys[5], (4 * H, H)),
        "bih1": u(keys[6], (4 * H,)), "bhh1": u(keys[7], (4 * H,)),
        "wfc": u(keys[8], (NUM_CLASSES, H)), "bfc": u(keys[9], (NUM_CLASSES,)),
    }


def prepare_params(p):
    """Transpose / cast / pad canonical PyTorch params into the kernel layout."""
    wfc = jnp.zeros((HIDDEN, FC_PAD), jnp.float32).at[:, :NUM_CLASSES].set(p["wfc"].T)
    bfc = jnp.zeros((1, FC_PAD), jnp.float32).at[:, :NUM_CLASSES].set(p["bfc"])
    return {
        "wih0": p["wih0"].T.astype(jnp.bfloat16),                     # (34, 256)
        "whh0": p["whh0"].T.astype(jnp.bfloat16),                     # (64, 256)
        "b0": (p["bih0"] + p["bhh0"])[None, :].astype(jnp.float32),   # (1, 256)
        "wih1": p["wih1"].T.astype(jnp.bfloat16),                     # (64, 256)
        "whh1": p["whh1"].T.astype(jnp.bfloat16),                     # (64, 256)
        "b1": (p["bih1"] + p["bhh1"])[None, :].astype(jnp.float32),   # (1, 256)
        "wfc": wfc,                                                   # (64, 128)
        "bfc": bfc,                                                   # (1, 128)
    }


def reference_forward(x, p):
    """Plain-JAX float32 reference reproducing nn.LSTM(2 layers) + nn.Linear."""
    B, T, _ = x.shape
    H = HIDDEN

    def cell(x_t, h, c, wih, whh, bih, bhh):
        g = x_t @ wih.T + h @ whh.T + bih + bhh
        i = jax.nn.sigmoid(g[:, 0:H])
        f = jax.nn.sigmoid(g[:, H:2 * H])
        gg = jnp.tanh(g[:, 2 * H:3 * H])
        o = jax.nn.sigmoid(g[:, 3 * H:4 * H])
        c = f * c + i * gg
        return o * jnp.tanh(c), c

    h0 = c0 = h1 = c1 = jnp.zeros((B, H), jnp.float32)
    for t in range(T):
        h0, c0 = cell(x[:, t], h0, c0, p["wih0"], p["whh0"], p["bih0"], p["bhh0"])
        h1, c1 = cell(h0, h1, c1, p["wih1"], p["whh1"], p["bih1"], p["bhh1"])
    return h1 @ p["wfc"].T + p["bfc"]


if __name__ == "__main__":
    key = jax.random.PRNGKey(0)
    kx, kp = jax.random.split(key)

    B, T = 2, 8
    x = jax.random.normal(kx, (B, T, INPUT_SIZE), jnp.float32)
    params = init_params(kp)
    kparams = prepare_params(params)

    out = accident_lstm_forward(x, kparams)
    out = jax.block_until_ready(out)

    ref = reference_forward(x, params)
    assert out.shape == (B, NUM_CLASSES)
    max_diff = float(jnp.max(jnp.abs(out - ref)))
    assert jnp.allclose(out, ref, atol=5e-2, rtol=5e-2), f"mismatch: max abs diff {max_diff}"

    print("KERNEL_OK")
</pallas_src>

<mosaic_0001>
module attributes {stable_mosaic.version = 11 : i64} {
  func.func @_lstm_fc_kernel(%arg0: i32, %arg1: i32, %arg2: memref<64x34xbf16, #tpu.memory_space<vmem>>, %arg3: memref<34x256xbf16, #tpu.memory_space<vmem>>, %arg4: memref<64x256xbf16, #tpu.memory_space<vmem>>, %arg5: memref<1x256xf32, #tpu.memory_space<vmem>>, %arg6: memref<64x256xbf16, #tpu.memory_space<vmem>>, %arg7: memref<64x256xbf16, #tpu.memory_space<vmem>>, %arg8: memref<1x256xf32, #tpu.memory_space<vmem>>, %arg9: memref<64x128xf32, #tpu.memory_space<vmem>>, %arg10: memref<1x128xf32, #tpu.memory_space<vmem>>, %arg11: memref<8x128xf32, #tpu.memory_space<vmem>>, %arg12: memref<64x256xf32, #tpu.memory_space<vmem>>, %arg13: memref<64x64xf32, #tpu.memory_space<vmem>>, %arg14: memref<8x64xf32, #tpu.memory_space<vmem>>, %arg15: memref<8x64xf32, #tpu.memory_space<vmem>>, %arg16: memref<8x64xf32, #tpu.memory_space<vmem>>, %arg17: memref<8x64xf32, #tpu.memory_space<vmem>>) attributes {dimension_semantics = [#tpu.dimension_semantics<parallel>, #tpu.dimension_semantics<arbitrary>], iteration_bounds = array<i64: 1, 1>, scalar_prefetch = 0 : i64, scratch_operands = 6 : i64, tpu.core_type = #tpu.core_type<tc>, window_params = [{transform_indices = @transform_0, window_bounds = array<i64: 64, 34>}, {pipeline_mode = #tpu.pipeline_mode<synchronous>, transform_indices = @transform_1, window_bounds = array<i64: 34, 256>}, {pipeline_mode = #tpu.pipeline_mode<synchronous>, transform_indices = @transform_2, window_bounds = array<i64: 64, 256>}, {pipeline_mode = #tpu.pipeline_mode<synchronous>, transform_indices = @transform_3, window_bounds = array<i64: 1, 256>}, {pipeline_mode = #tpu.pipeline_mode<synchronous>, transform_indices = @transform_4, window_bounds = array<i64: 64, 256>}, {pipeline_mode = #tpu.pipeline_mode<synchronous>, transform_indices = @transform_5, window_bounds = array<i64: 64, 256>}, {pipeline_mode = #tpu.pipeline_mode<synchronous>, transform_indices = @transform_6, window_bounds = array<i64: 1, 256>}, {pipeline_mode = #tpu.pipeline_mode<synchronous>, transform_indices = @transform_7, window_bounds = array<i64: 64, 128>}, {pipeline_mode = #tpu.pipeline_mode<synchronous>, transform_indices = @transform_8, window_bounds = array<i64: 1, 128>}, {transform_indices = @transform_9, window_bounds = array<i64: 8, 128>}]} {
    %c0_i32 = arith.constant 0 : i32
    %0 = arith.cmpi eq, %arg1, %c0_i32 : i32
    %1 = arith.extui %0 : i1 to i32
    %c0_i32_0 = arith.constant 0 : i32
    %2 = arith.cmpi ne, %1, %c0_i32_0 : i32
    scf.if %2 {
      %cst_145 = arith.constant 0.000000e+00 : f32
      %487 = vector.broadcast %cst_145 : f32 to vector<8x64xf32>
      %c0_146 = arith.constant 0 : index
      %c0_147 = arith.constant 0 : index
      %488 = vector.load %arg14[%c0_146, %c0_147] : memref<8x64xf32, #tpu.memory_space<vmem>>, vector<8x64xf32>
      tpu.vector_store %arg14[%c0_146, %c0_147], %487 {strides = array<i32>} : memref<8x64xf32, #tpu.memory_space<vmem>>, vector<8x64xf32>,
      %cst_148 = arith.constant 0.000000e+00 : f32
      %489 = vector.broadcast %cst_148 : f32 to vector<8x64xf32>
      %c0_149 = arith.constant 0 : index
      %c0_150 = arith.constant 0 : index
      %490 = vector.load %arg15[%c0_149, %c0_150] : memref<8x64xf32, #tpu.memory_space<vmem>>, vector<8x64xf32>
      tpu.vector_store %arg15[%c0_149, %c0_150], %489 {strides = array<i32>} : memref<8x64xf32, #tpu.memory_space<vmem>>, vector<8x64xf32>,
      %cst_151 = arith.constant 0.000000e+00 : f32
      %491 = vector.broadcast %cst_151 : f32 to vector<8x64xf32>
      %c0_152 = arith.constant 0 : index
      %c0_153 = arith.constant 0 : index
      %492 = vector.load %arg16[%c0_152, %c0_153] : memref<8x64xf32, #tpu.memory_space<vmem>>, vector<8x64xf32>
      tpu.vector_store %arg16[%c0_152, %c0_153], %491 {strides = array<i32>} : memref<8x64xf32, #tpu.memory_space<vmem>>, vector<8x64xf32>,
      %cst_154 = arith.constant 0.000000e+00 : f32
      %493 = vector.broadcast %cst_154 : f32 to vector<8x64xf32>
      %c0_155 = arith.constant 0 : index
      %c0_156 = arith.constant 0 : index
      %494 = vector.load %arg17[%c0_155, %c0_156] : memref<8x64xf32, #tpu.memory_space<vmem>>, vector<8x64xf32>
      tpu.vector_store %arg17[%c0_155, %c0_156], %493 {strides = array<i32>} : memref<8x64xf32, #tpu.memory_space<vmem>>, vector<8x64xf32>,
    } else {
    }
    %c0 = arith.constant 0 : index
    %c0_1 = arith.constant 0 : index
    %3 = vector.load %arg4[%c0, %c0_1] : memref<64x256xbf16, #tpu.memory_space<vmem>>, vector<64x256xbf16>
    %c0_2 = arith.constant 0 : index
    %c0_3 = arith.constant 0 : index
    %4 = vector.load %arg7[%c0_2, %c0_3] : memref<64x256xbf16, #tpu.memory_space<vmem>>, vector<64x256xbf16>
    %c0_4 = arith.constant 0 : index
    %c0_5 = arith.constant 0 : index
    %5 = vector.load %arg2[%c0_4, %c0_5] : memref<64x34xbf16, #tpu.memory_space<vmem>>, vector<64x34xbf16>
    %c0_6 = arith.constant 0 : index
    %c0_7 = arith.constant 0 : index
    %6 = vector.load %arg3[%c0_6, %c0_7] : memref<34x256xbf16, #tpu.memory_space<vmem>>, vector<34x256xbf16>
    %cst = arith.constant dense<0.000000e+00> : vector<64x256xf32>
    %7 = tpu.matmul %5, %6, %cst {dimension_numbers = #tpu.dot_dimension_numbers<[1], [0], [0], [1], [0, 0, 1, 1], [], []>} : vector<64x34xbf16>, vector<34x256xbf16>, vector<64x256xf32> -> vector<64x256xf32>
    %c0_8 = arith.constant 0 : index
    %c0_9 = arith.constant 0 : index
    %8 = vector.load %arg5[%c0_8, %c0_9] : memref<1x256xf32, #tpu.memory_space<vmem>>, vector<1x256xf32>
    %9 = vector.broadcast %8 : vector<1x256xf32> to vector<64x256xf32>
    %10 = arith.addf %7, %9 : vector<64x256xf32>
    %c0_10 = arith.constant 0 : index
    %c0_11 = arith.constant 0 : index
    %11 = vector.load %arg12[%c0_10, %c0_11] : memref<64x256xf32, #tpu.memory_space<vmem>>, vector<64x256xf32>
    tpu.vector_store %arg12[%c0_10, %c0_11], %10 {strides = array<i32>} : memref<64x256xf32, #tpu.memory_space<vmem>>, vector<64x256xf32>,
    %c0_12 = arith.constant 0 : index
    %c0_13 = arith.constant 0 : index
    %12 = vector.load %arg14[%c0_12, %c0_13] : memref<8x64xf32, #tpu.memory_space<vmem>>, vector<8x64xf32>
    %c0_14 = arith.constant 0 : index
    %c0_15 = arith.constant 0 : index
    %13 = vector.load %arg15[%c0_14, %c0_15] : memref<8x64xf32, #tpu.memory_space<vmem>>, vector<8x64xf32>
    %c0_i32_16 = arith.constant 0 : i32
    %c8_i32 = arith.constant 8 : i32
    %14 = arith.muli %c0_i32_16, %c8_i32 : i32
    %15 = arith.index_cast %14 : i32 to index
    %c0_17 = arith.constant 0 : index
    %16 = vector.load %arg12[%15, %c0_17] : memref<64x256xf32, #tpu.memory_space<vmem>>, vector<8x256xf32>
    %17 = arith.truncf %12 : vector<8x64xf32> to vector<8x64xbf16>
    %cst_18 = arith.constant dense<0.000000e+00> : vector<8x256xf32>
    %18 = tpu.matmul %17, %3, %cst_18 {dimension_numbers = #tpu.dot_dimension_numbers<[1], [0], [0], [1], [0, 0, 1, 1], [], []>} : vector<8x64xbf16>, vector<64x256xbf16>, vector<8x256xf32> -> vector<8x256xf32>
    %19 = arith.addf %16, %18 : vector<8x256xf32>
    %20 = vector.extract_strided_slice %19 {offsets = [0, 0], sizes = [8, 128], strides = [1, 1]} : vector<8x256xf32> to vector<8x128xf32>
    %21 = arith.negf %20 : vector<8x128xf32>
    %22 = math.exp %21 : vector<8x128xf32>
    %cst_19 = arith.constant 1.000000e+00 : f32
    %23 = vector.broadcast %cst_19 : f32 to vector<8x128xf32>
    %24 = arith.addf %23, %22 : vector<8x128xf32>
    %25 = arith.divf %23, %24 : vector<8x128xf32>
    %26 = vector.extract_strided_slice %25 {offsets = [0, 0], sizes = [8, 64], strides = [1, 1]} : vector<8x128xf32> to vector<8x64xf32>
    %27 = vector.extract_strided_slice %25 {offsets = [0, 64], sizes = [8, 64], strides = [1, 1]} : vector<8x128xf32> to vector<8x64xf32>
    %28 = vector.extract_strided_slice %19 {offsets = [0, 128], sizes = [8, 64], strides = [1, 1]} : vector<8x256xf32> to vector<8x64xf32>
    %29 = math.tanh %28 : vector<8x64xf32>
    %30 = vector.extract_strided_slice %19 {offsets = [0, 192], sizes = [8, 64], strides = [1, 1]} : vector<8x256xf32> to vector<8x64xf32>
    %31 = arith.negf %30 : vector<8x64xf32>
    %32 = math.exp %31 : vector<8x64xf32>
    %cst_20 = arith.constant 1.000000e+00 : f32
    %33 = vector.broadcast %cst_20 : f32 to vector<8x64xf32>
    %34 = arith.addf %33, %32 : vector<8x64xf32>
    %35 = arith.divf %33, %34 : vector<8x64xf32>
    %36 = arith.mulf %27, %13 : vector<8x64xf32>
    %37 = arith.mulf %26, %29 : vector<8x64xf32>
    %38 = arith.addf %36, %37 : vector<8x64xf32>
    %39 = math.tanh %38 : vector<8x64xf32>
    %40 = arith.mulf %35, %39 : vector<8x64xf32>
    %c8_i32_21 = arith.constant 8 : i32
    %41 = arith.muli %c0_i32_16, %c8_i32_21 : i32
    %42 = arith.index_cast %41 : i32 to index
    %c0_22 = arith.constant 0 : index
    %43 = vector.load %arg13[%42, %c0_22] : memref<64x64xf32, #tpu.memory_space<vmem>>, vector<8x64xf32>
    tpu.vector_store %arg13[%42, %c0_22], %40 {strides = array<i32>} : memref<64x64xf32, #tpu.memory_space<vmem>>, vector<8x64xf32>,
    %c1_i32 = arith.constant 1 : i32
    %c8_i32_23 = arith.constant 8 : i32
    %44 = arith.muli %c1_i32, %c8_i32_23 : i32
    %45 = arith.index_cast %44 : i32 to index
    %c0_24 = arith.constant 0 : index
    %46 = vector.load %arg12[%45, %c0_24] : memref<64x256xf32, #tpu.memory_space<vmem>>, vector<8x256xf32>
    %47 = arith.truncf %40 : vector<8x64xf32> to vector<8x64xbf16>
    %cst_25 = arith.constant dense<0.000000e+00> : vector<8x256xf32>
    %48 = tpu.matmul %47, %3, %cst_25 {dimension_numbers = #tpu.dot_dimension_numbers<[1], [0], [0], [1], [0, 0, 1, 1], [], []>} : vector<8x64xbf16>, vector<64x256xbf16>, vector<8x256xf32> -> vector<8x256xf32>
    %49 = arith.addf %46, %48 : vector<8x256xf32>
    %50 = vector.extract_strided_slice %49 {offsets = [0, 0], sizes = [8, 128], strides = [1, 1]} : vector<8x256xf32> to vector<8x128xf32>
    %51 = arith.negf %50 : vector<8x128xf32>
    %52 = math.exp %51 : vector<8x128xf32>
    %cst_26 = arith.constant 1.000000e+00 : f32
    %53 = vector.broadcast %cst_26 : f32 to vector<8x128xf32>
    %54 = arith.addf %53, %52 : vector<8x128xf32>
    %55 = arith.divf %53, %54 : vector<8x128xf32>
    %56 = vector.extract_strided_slice %55 {offsets = [0, 0], sizes = [8, 64], strides = [1, 1]} : vector<8x128xf32> to vector<8x64xf32>
    %57 = vector.extract_strided_slice %55 {offsets = [0, 64], sizes = [8, 64], strides = [1, 1]} : vector<8x128xf32> to vector<8x64xf32>
    %58 = vector.extract_strided_slice %49 {offsets = [0, 128], sizes = [8, 64], strides = [1, 1]} : vector<8x256xf32> to vector<8x64xf32>
    %59 = math.tanh %58 : vector<8x64xf32>
    %60 = vector.extract_strided_slice %49 {offsets = [0, 192], sizes = [8, 64], strides = [1, 1]} : vector<8x256xf32> to vector<8x64xf32>
    %61 = arith.negf %60 : vector<8x64xf32>
    %62 = math.exp %61 : vector<8x64xf32>
    %cst_27 = arith.constant 1.000000e+00 : f32
    %63 = vector.broadcast %cst_27 : f32 to vector<8x64xf32>
    %64 = arith.addf %63, %62 : vector<8x64xf32>
    %65 = arith.divf %63, %64 : vector<8x64xf32>
    %66 = arith.mulf %57, %38 : vector<8x64xf32>
    %67 = arith.mulf %56, %59 : vector<8x64xf32>
    %68 = arith.addf %66, %67 : vector<8x64xf32>
    %69 = math.tanh %68 : vector<8x64xf32>
    %70 = arith.mulf %65, %69 : vector<8x64xf32>
    %c8_i32_28 = arith.constant 8 : i32
    %71 = arith.muli %c1_i32, %c8_i32_28 : i32
    %72 = arith.index_cast %71 : i32 to index
    %c0_29 = arith.constant 0 : index
    %73 = vector.load %arg13[%72, %c0_29] : memref<64x64xf32, #tpu.memory_space<vmem>>, vector<8x64xf32>
    tpu.vector_store %arg13[%72, %c0_29], %70 {strides = array<i32>} : memref<64x64xf32, #tpu.memory_space<vmem>>, vector<8x64xf32>,
    %c2_i32 = arith.constant 2 : i32
    %c8_i32_30 = arith.constant 8 : i32
    %74 = arith.muli %c2_i32, %c8_i32_30 : i32
    %75 = arith.index_cast %74 : i32 to index
    %c0_31 = arith.constant 0 : index
    %76 = vector.load %arg12[%75, %c0_31] : memref<64x256xf32, #tpu.memory_space<vmem>>, vector<8x256xf32>
    %77 = arith.truncf %70 : vector<8x64xf32> to vector<8x64xbf16>
    %cst_32 = arith.constant dense<0.000000e+00> : vector<8x256xf32>
    %78 = tpu.matmul %77, %3, %cst_32 {dimension_numbers = #tpu.dot_dimension_numbers<[1], [0], [0], [1], [0, 0, 1, 1], [], []>} : vector<8x64xbf16>, vector<64x256xbf16>, vector<8x256xf32> -> vector<8x256xf32>
    %79 = arith.addf %76, %78 : vector<8x256xf32>
    %80 = vector.extract_strided_slice %79 {offsets = [0, 0], sizes = [8, 128], strides = [1, 1]} : vector<8x256xf32> to vector<8x128xf32>
    %81 = arith.negf %80 : vector<8x128xf32>
    %82 = math.exp %81 : vector<8x128xf32>
    %cst_33 = arith.constant 1.000000e+00 : f32
    %83 = vector.broadcast %cst_33 : f32 to vector<8x128xf32>
    %84 = arith.addf %83, %82 : vector<8x128xf32>
    %85 = arith.divf %83, %84 : vector<8x128xf32>
    %86 = vector.extract_strided_slice %85 {offsets = [0, 0], sizes = [8, 64], strides = [1, 1]} : vector<8x128xf32> to vector<8x64xf32>
    %87 = vector.extract_strided_slice %85 {offsets = [0, 64], sizes = [8, 64], strides = [1, 1]} : vector<8x128xf32> to vector<8x64xf32>
    %88 = vector.extract_strided_slice %79 {offsets = [0, 128], sizes = [8, 64], strides = [1, 1]} : vector<8x256xf32> to vector<8x64xf32>
    %89 = math.tanh %88 : vector<8x64xf32>
    %90 = vector.extract_strided_slice %79 {offsets = [0, 192], sizes = [8, 64], strides = [1, 1]} : vector<8x256xf32> to vector<8x64xf32>
    %91 = arith.negf %90 : vector<8x64xf32>
    %92 = math.exp %91 : vector<8x64xf32>
    %cst_34 = arith.constant 1.000000e+00 : f32
    %93 = vector.broadcast %cst_34 : f32 to vector<8x64xf32>
    %94 = arith.addf %93, %92 : vector<8x64xf32>
    %95 = arith.divf %93, %94 : vector<8x64xf32>
    %96 = arith.mulf %87, %68 : vector<8x64xf32>
    %97 = arith.mulf %86, %89 : vector<8x64xf32>
    %98 = arith.addf %96, %97 : vector<8x64xf32>
    %99 = math.tanh %98 : vector<8x64xf32>
    %100 = arith.mulf %95, %99 : vector<8x64xf32>
    %c8_i32_35 = arith.constant 8 : i32
    %101 = arith.muli %c2_i32, %c8_i32_35 : i32
    %102 = arith.index_cast %101 : i32 to index
    %c0_36 = arith.constant 0 : index
    %103 = vector.load %arg13[%102, %c0_36] : memref<64x64xf32, #tpu.memory_space<vmem>>, vector<8x64xf32>
    tpu.vector_store %arg13[%102, %c0_36], %100 {strides = array<i32>} : memref<64x64xf32, #tpu.memory_space<vmem>>, vector<8x64xf32>,
    %c3_i32 = arith.constant 3 : i32
    %c8_i32_37 = arith.constant 8 : i32
    %104 = arith.muli %c3_i32, %c8_i32_37 : i32
    %105 = arith.index_cast %104 : i32 to index
    %c0_38 = arith.constant 0 : index
    %106 = vector.load %arg12[%105, %c0_38] : memref<64x256xf32, #tpu.memory_space<vmem>>, vector<8x256xf32>
    %107 = arith.truncf %100 : vector<8x64xf32> to vector<8x64xbf16>
    %cst_39 = arith.constant dense<0.000000e+00> : vector<8x256xf32>
    %108 = tpu.matmul %107, %3, %cst_39 {dimension_numbers = #tpu.dot_dimension_numbers<[1], [0], [0], [1], [0, 0, 1, 1], [], []>} : vector<8x64xbf16>, vector<64x256xbf16>, vector<8x256xf32> -> vector<8x256xf32>
    %109 = arith.addf %106, %108 : vector<8x256xf32>
    %110 = vector.extract_strided_slice %109 {offsets = [0, 0], sizes = [8, 128], strides = [1, 1]} : vector<8x256xf32> to vector<8x128xf32>
    %111 = arith.negf %110 : vector<8x128xf32>
    %112 = math.exp %111 : vector<8x128xf32>
    %cst_40 = arith.constant 1.000000e+00 : f32
    %113 = vector.broadcast %cst_40 : f32 to vector<8x128xf32>
    %114 = arith.addf %113, %112 : vector<8x128xf32>
    %115 = arith.divf %113, %114 : vector<8x128xf32>
    %116 = vector.extract_strided_slice %115 {offsets = [0, 0], sizes = [8, 64], strides = [1, 1]} : vector<8x128xf32> to vector<8x64xf32>
    %117 = vector.extract_strided_slice %115 {offsets = [0, 64], sizes = [8, 64], strides = [1, 1]} : vector<8x128xf32> to vector<8x64xf32>
    %118 = vector.extract_strided_slice %109 {offsets = [0, 128], sizes = [8, 64], strides = [1, 1]} : vector<8x256xf32> to vector<8x64xf32>
    %119 = math.tanh %118 : vector<8x64xf32>
    %120 = vector.extract_strided_slice %109 {offsets = [0, 192], sizes = [8, 64], strides = [1, 1]} : vector<8x256xf32> to vector<8x64xf32>
    %121 = arith.negf %120 : vector<8x64xf32>
    %122 = math.exp %121 : vector<8x64xf32>
    %cst_41 = arith.constant 1.000000e+00 : f32
    %123 = vector.broadcast %cst_41 : f32 to vector<8x64xf32>
    %124 = arith.addf %123, %122 : vector<8x64xf32>
    %125 = arith.divf %123, %124 : vector<8x64xf32>
    %126 = arith.mulf %117, %98 : vector<8x64xf32>
    %127 = arith.mulf %116, %119 : vector<8x64xf32>
    %128 = arith.addf %126, %127 : vector<8x64xf32>
    %129 = math.tanh %128 : vector<8x64xf32>
    %130 = arith.mulf %125, %129 : vector<8x64xf32>
    %c8_i32_42 = arith.constant 8 : i32
    %131 = arith.muli %c3_i32, %c8_i32_42 : i32
    %132 = arith.index_cast %131 : i32 to index
    %c0_43 = arith.constant 0 : index
    %133 = vector.load %arg13[%132, %c0_43] : memref<64x64xf32, #tpu.memory_space<vmem>>, vector<8x64xf32>
    tpu.vector_store %arg13[%132, %c0_43], %130 {strides = array<i32>} : memref<64x64xf32, #tpu.memory_space<vmem>>, vector<8x64xf32>,
    %c4_i32 = arith.constant 4 : i32
    %c8_i32_44 = arith.constant 8 : i32
    %134 = arith.muli %c4_i32, %c8_i32_44 : i32
    %135 = arith.index_cast %134 : i32 to index
    %c0_45 = arith.constant 0 : index
    %136 = vector.load %arg12[%135, %c0_45] : memref<64x256xf32, #tpu.memory_space<vmem>>, vector<8x256xf32>
    %137 = arith.truncf %130 : vector<8x64xf32> to vector<8x64xbf16>
    %cst_46 = arith.constant dense<0.000000e+00> : vector<8x256xf32>
    %138 = tpu.matmul %137, %3, %cst_46 {dimension_numbers = #tpu.dot_dimension_numbers<[1], [0], [0], [1], [0, 0, 1, 1], [], []>} : vector<8x64xbf16>, vector<64x256xbf16>, vector<8x256xf32> -> vector<8x256xf32>
    %139 = arith.addf %136, %138 : vector<8x256xf32>
    %140 = vector.extract_strided_slice %139 {offsets = [0, 0], sizes = [8, 128], strides = [1, 1]} : vector<8x256xf32> to vector<8x128xf32>
    %141 = arith.negf %140 : vector<8x128xf32>
    %142 = math.exp %141 : vector<8x128xf32>
    %cst_47 = arith.constant 1.000000e+00 : f32
    %143 = vector.broadcast %cst_47 : f32 to vector<8x128xf32>
    %144 = arith.addf %143, %142 : vector<8x128xf32>
    %145 = arith.divf %143, %144 : vector<8x128xf32>
    %146 = vector.extract_strided_slice %145 {offsets = [0, 0], sizes = [8, 64], strides = [1, 1]} : vector<8x128xf32> to vector<8x64xf32>
    %147 = vector.extract_strided_slice %145 {offsets = [0, 64], sizes = [8, 64], strides = [1, 1]} : vector<8x128xf32> to vector<8x64xf32>
    %148 = vector.extract_strided_slice %139 {offsets = [0, 128], sizes = [8, 64], strides = [1, 1]} : vector<8x256xf32> to vector<8x64xf32>
    %149 = math.tanh %148 : vector<8x64xf32>
    %150 = vector.extract_strided_slice %139 {offsets = [0, 192], sizes = [8, 64], strides = [1, 1]} : vector<8x256xf32> to vector<8x64xf32>
    %151 = arith.negf %150 : vector<8x64xf32>
    %152 = math.exp %151 : vector<8x64xf32>
    %cst_48 = arith.constant 1.000000e+00 : f32
    %153 = vector.broadcast %cst_48 : f32 to vector<8x64xf32>
    %154 = arith.addf %153, %152 : vector<8x64xf32>
    %155 = arith.divf %153, %154 : vector<8x64xf32>
    %156 = arith.mulf %147, %128 : vector<8x64xf32>
    %157 = arith.mulf %146, %149 : vector<8x64xf32>
    %158 = arith.addf %156, %157 : vector<8x64xf32>
    %159 = math.tanh %158 : vector<8x64xf32>
    %160 = arith.mulf %155, %159 : vector<8x64xf32>
    %c8_i32_49 = arith.constant 8 : i32
    %161 = arith.muli %c4_i32, %c8_i32_49 : i32
    %162 = arith.index_cast %161 : i32 to index
    %c0_50 = arith.constant 0 : index
    %163 = vector.load %arg13[%162, %c0_50] : memref<64x64xf32, #tpu.memory_space<vmem>>, vector<8x64xf32>
    tpu.vector_store %arg13[%162, %c0_50], %160 {strides = array<i32>} : memref<64x64xf32, #tpu.memory_space<vmem>>, vector<8x64xf32>,
    %c5_i32 = arith.constant 5 : i32
    %c8_i32_51 = arith.constant 8 : i32
    %164 = arith.muli %c5_i32, %c8_i32_51 : i32
    %165 = arith.index_cast %164 : i32 to index
    %c0_52 = arith.constant 0 : index
    %166 = vector.load %arg12[%165, %c0_52] : memref<64x256xf32, #tpu.memory_space<vmem>>, vector<8x256xf32>
    %167 = arith.truncf %160 : vector<8x64xf32> to vector<8x64xbf16>
    %cst_53 = arith.constant dense<0.000000e+00> : vector<8x256xf32>
    %168 = tpu.matmul %167, %3, %cst_53 {dimension_numbers = #tpu.dot_dimension_numbers<[1], [0], [0], [1], [0, 0, 1, 1], [], []>} : vector<8x64xbf16>, vector<64x256xbf16>, vector<8x256xf32> -> vector<8x256xf32>
    %169 = arith.addf %166, %168 : vector<8x256xf32>
    %170 = vector.extract_strided_slice %169 {offsets = [0, 0], sizes = [8, 128], strides = [1, 1]} : vector<8x256xf32> to vector<8x128xf32>
    %171 = arith.negf %170 : vector<8x128xf32>
    %172 = math.exp %171 : vector<8x128xf32>
    %cst_54 = arith.constant 1.000000e+00 : f32
    %173 = vector.broadcast %cst_54 : f32 to vector<8x128xf32>
    %174 = arith.addf %173, %172 : vector<8x128xf32>
    %175 = arith.divf %173, %174 : vector<8x128xf32>
    %176 = vector.extract_strided_slice %175 {offsets = [0, 0], sizes = [8, 64], strides = [1, 1]} : vector<8x128xf32> to vector<8x64xf32>
    %177 = vector.extract_strided_slice %175 {offsets = [0, 64], sizes = [8, 64], strides = [1, 1]} : vector<8x128xf32> to vector<8x64xf32>
    %178 = vector.extract_strided_slice %169 {offsets = [0, 128], sizes = [8, 64], strides = [1, 1]} : vector<8x256xf32> to vector<8x64xf32>
    %179 = math.tanh %178 : vector<8x64xf32>
    %180 = vector.extract_strided_slice %169 {offsets = [0, 192], sizes = [8, 64], strides = [1, 1]} : vector<8x256xf32> to vector<8x64xf32>
    %181 = arith.negf %180 : vector<8x64xf32>
    %182 = math.exp %181 : vector<8x64xf32>
    %cst_55 = arith.constant 1.000000e+00 : f32
    %183 = vector.broadcast %cst_55 : f32 to vector<8x64xf32>
    %184 = arith.addf %183, %182 : vector<8x64xf32>
    %185 = arith.divf %183, %184 : vector<8x64xf32>
    %186 = arith.mulf %177, %158 : vector<8x64xf32>
    %187 = arith.mulf %176, %179 : vector<8x64xf32>
    %188 = arith.addf %186, %187 : vector<8x64xf32>
    %189 = math.tanh %188 : vector<8x64xf32>
    %190 = arith.mulf %185, %189 : vector<8x64xf32>
    %c8_i32_56 = arith.constant 8 : i32
    %191 = arith.muli %c5_i32, %c8_i32_56 : i32
    %192 = arith.index_cast %191 : i32 to index
    %c0_57 = arith.constant 0 : index
    %193 = vector.load %arg13[%192, %c0_57] : memref<64x64xf32, #tpu.memory_space<vmem>>, vector<8x64xf32>
    tpu.vector_store %arg13[%192, %c0_57], %190 {strides = array<i32>} : memref<64x64xf32, #tpu.memory_space<vmem>>, vector<8x64xf32>,
    %c6_i32 = arith.constant 6 : i32
    %c8_i32_58 = arith.constant 8 : i32
    %194 = arith.muli %c6_i32, %c8_i32_58 : i32
    %195 = arith.index_cast %194 : i32 to index
    %c0_59 = arith.constant 0 : index
    %196 = vector.load %arg12[%195, %c0_59] : memref<64x256xf32, #tpu.memory_space<vmem>>, vector<8x256xf32>
    %197 = arith.truncf %190 : vector<8x64xf32> to vector<8x64xbf16>
    %cst_60 = arith.constant dense<0.000000e+00> : vector<8x256xf32>
    %198 = tpu.matmul %197, %3, %cst_60 {dimension_numbers = #tpu.dot_dimension_numbers<[1], [0], [0], [1], [0, 0, 1, 1], [], []>} : vector<8x64xbf16>, vector<64x256xbf16>, vector<8x256xf32> -> vector<8x256xf32>
    %199 = arith.addf %196, %198 : vector<8x256xf32>
    %200 = vector.extract_strided_slice %199 {offsets = [0, 0], sizes = [8, 128], strides = [1, 1]} : vector<8x256xf32> to vector<8x128xf32>
    %201 = arith.negf %200 : vector<8x128xf32>
    %202 = math.exp %201 : vector<8x128xf32>
    %cst_61 = arith.constant 1.000000e+00 : f32
    %203 = vector.broadcast %cst_61 : f32 to vector<8x128xf32>
    %204 = arith.addf %203, %202 : vector<8x128xf32>
    %205 = arith.divf %203, %204 : vector<8x128xf32>
    %206 = vector.extract_strided_slice %205 {offsets = [0, 0], sizes = [8, 64], strides = [1, 1]} : vector<8x128xf32> to vector<8x64xf32>
    %207 = vector.extract_strided_slice %205 {offsets = [0, 64], sizes = [8, 64], strides = [1, 1]} : vector<8x128xf32> to vector<8x64xf32>
    %208 = vector.extract_strided_slice %199 {offsets = [0, 128], sizes = [8, 64], strides = [1, 1]} : vector<8x256xf32> to vector<8x64xf32>
    %209 = math.tanh %208 : vector<8x64xf32>
    %210 = vector.extract_strided_slice %199 {offsets = [0, 192], sizes = [8, 64], strides = [1, 1]} : vector<8x256xf32> to vector<8x64xf32>
    %211 = arith.negf %210 : vector<8x64xf32>
    %212 = math.exp %211 : vector<8x64xf32>
    %cst_62 = arith.constant 1.000000e+00 : f32
    %213 = vector.broadcast %cst_62 : f32 to vector<8x64xf32>
    %214 = arith.addf %213, %212 : vector<8x64xf32>
    %215 = arith.divf %213, %214 : vector<8x64xf32>
    %216 = arith.mulf %207, %188 : vector<8x64xf32>
    %217 = arith.mulf %206, %209 : vector<8x64xf32>
    %218 = arith.addf %216, %217 : vector<8x64xf32>
    %219 = math.tanh %218 : vector<8x64xf32>
    %220 = arith.mulf %215, %219 : vector<8x64xf32>
    %c8_i32_63 = arith.constant 8 : i32
    %221 = arith.muli %c6_i32, %c8_i32_63 : i32
    %222 = arith.index_cast %221 : i32 to index
    %c0_64 = arith.constant 0 : index
    %223 = vector.load %arg13[%222, %c0_64] : memref<64x64xf32, #tpu.memory_space<vmem>>, vector<8x64xf32>
    tpu.vector_store %arg13[%222, %c0_64], %220 {strides = array<i32>} : memref<64x64xf32, #tpu.memory_space<vmem>>, vector<8x64xf32>,
    %c7_i32 = arith.constant 7 : i32
    %c8_i32_65 = arith.constant 8 : i32
    %224 = arith.muli %c7_i32, %c8_i32_65 : i32
    %225 = arith.index_cast %224 : i32 to index
    %c0_66 = arith.constant 0 : index
    %226 = vector.load %arg12[%225, %c0_66] : memref<64x256xf32, #tpu.memory_space<vmem>>, vector<8x256xf32>
    %227 = arith.truncf %220 : vector<8x64xf32> to vector<8x64xbf16>
    %cst_67 = arith.constant dense<0.000000e+00> : vector<8x256xf32>
    %228 = tpu.matmul %227, %3, %cst_67 {dimension_numbers = #tpu.dot_dimension_numbers<[1], [0], [0], [1], [0, 0, 1, 1], [], []>} : vector<8x64xbf16>, vector<64x256xbf16>, vector<8x256xf32> -> vector<8x256xf32>
    %229 = arith.addf %226, %228 : vector<8x256xf32>
    %230 = vector.extract_strided_slice %229 {offsets = [0, 0], sizes = [8, 128], strides = [1, 1]} : vector<8x256xf32> to vector<8x128xf32>
    %231 = arith.negf %230 : vector<8x128xf32>
    %232 = math.exp %231 : vector<8x128xf32>
    %cst_68 = arith.constant 1.000000e+00 : f32
    %233 = vector.broadcast %cst_68 : f32 to vector<8x128xf32>
    %234 = arith.addf %233, %232 : vector<8x128xf32>
    %235 = arith.divf %233, %234 : vector<8x128xf32>
    %236 = vector.extract_strided_slice %235 {offsets = [0, 0], sizes = [8, 64], strides = [1, 1]} : vector<8x128xf32> to vector<8x64xf32>
    %237 = vector.extract_strided_slice %235 {offsets = [0, 64], sizes = [8, 64], strides = [1, 1]} : vector<8x128xf32> to vector<8x64xf32>
    %238 = vector.extract_strided_slice %229 {offsets = [0, 128], sizes = [8, 64], strides = [1, 1]} : vector<8x256xf32> to vector<8x64xf32>
    %239 = math.tanh %238 : vector<8x64xf32>
    %240 = vector.extract_strided_slice %229 {offsets = [0, 192], sizes = [8, 64], strides = [1, 1]} : vector<8x256xf32> to vector<8x64xf32>
    %241 = arith.negf %240 : vector<8x64xf32>
    %242 = math.exp %241 : vector<8x64xf32>
    %cst_69 = arith.constant 1.000000e+00 : f32
    %243 = vector.broadcast %cst_69 : f32 to vector<8x64xf32>
    %244 = arith.addf %243, %242 : vector<8x64xf32>
    %245 = arith.divf %243, %244 : vector<8x64xf32>
    %246 = arith.mulf %237, %218 : vector<8x64xf32>
    %247 = arith.mulf %236, %239 : vector<8x64xf32>
    %248 = arith.addf %246, %247 : vector<8x64xf32>
    %249 = math.tanh %248 : vector<8x64xf32>
    %250 = arith.mulf %245, %249 : vector<8x64xf32>
    %c8_i32_70 = arith.constant 8 : i32
    %251 = arith.muli %c7_i32, %c8_i32_70 : i32
    %252 = arith.index_cast %251 : i32 to index
    %c0_71 = arith.constant 0 : index
    %253 = vector.load %arg13[%252, %c0_71] : memref<64x64xf32, #tpu.memory_space<vmem>>, vector<8x64xf32>
    tpu.vector_store %arg13[%252, %c0_71], %250 {strides = array<i32>} : memref<64x64xf32, #tpu.memory_space<vmem>>, vector<8x64xf32>,
    %c8_i32_72 = arith.constant 8 : i32
    %c0_73 = arith.constant 0 : index
    %c0_74 = arith.constant 0 : index
    %254 = vector.load %arg14[%c0_73, %c0_74] : memref<8x64xf32, #tpu.memory_space<vmem>>, vector<8x64xf32>
    tpu.vector_store %arg14[%c0_73, %c0_74], %250 {strides = array<i32>} : memref<8x64xf32, #tpu.memory_space<vmem>>, vector<8x64xf32>,
    %c0_75 = arith.constant 0 : index
    %c0_76 = arith.constant 0 : index
    %255 = vector.load %arg15[%c0_75, %c0_76] : memref<8x64xf32, #tpu.memory_space<vmem>>, vector<8x64xf32>
    tpu.vector_store %arg15[%c0_75, %c0_76], %248 {strides = array<i32>} : memref<8x64xf32, #tpu.memory_space<vmem>>, vector<8x64xf32>,
    %c0_77 = arith.constant 0 : index
    %c0_78 = arith.constant 0 : index
    %256 = vector.load %arg13[%c0_77, %c0_78] : memref<64x64xf32, #tpu.memory_space<vmem>>, vector<64x64xf32>
    %257 = arith.truncf %256 : vector<64x64xf32> to vector<64x64xbf16>
    %c0_79 = arith.constant 0 : index
    %c0_80 = arith.constant 0 : index
    %258 = vector.load %arg6[%c0_79, %c0_80] : memref<64x256xbf16, #tpu.memory_space<vmem>>, vector<64x256xbf16>
    %cst_81 = arith.constant dense<0.000000e+00> : vector<64x256xf32>
    %259 = tpu.matmul %257, %258, %cst_81 {dimension_numbers = #tpu.dot_dimension_numbers<[1], [0], [0], [1], [0, 0, 1, 1], [], []>} : vector<64x64xbf16>, vector<64x256xbf16>, vector<64x256xf32> -> vector<64x256xf32>
    %c0_82 = arith.constant 0 : index
    %c0_83 = arith.constant 0 : index
    %260 = vector.load %arg8[%c0_82, %c0_83] : memref<1x256xf32, #tpu.memory_space<vmem>>, vector<1x256xf32>
    %261 = vector.broadcast %260 : vector<1x256xf32> to vector<64x256xf32>
    %262 = arith.addf %259, %261 : vector<64x256xf32>
    %c0_84 = arith.constant 0 : index
    %c0_85 = arith.constant 0 : index
    %263 = vector.load %arg12[%c0_84, %c0_85] : memref<64x256xf32, #tpu.memory_space<vmem>>, vector<64x256xf32>
    tpu.vector_store %arg12[%c0_84, %c0_85], %262 {strides = array<i32>} : memref<64x256xf32, #tpu.memory_space<vmem>>, vector<64x256xf32>,
    %c0_86 = arith.constant 0 : index
    %c0_87 = arith.constant 0 : index
    %264 = vector.load %arg16[%c0_86, %c0_87] : memref<8x64xf32, #tpu.memory_space<vmem>>, vector<8x64xf32>
    %c0_88 = arith.constant 0 : index
    %c0_89 = arith.constant 0 : index
    %265 = vector.load %arg17[%c0_88, %c0_89] : memref<8x64xf32, #tpu.memory_space<vmem>>, vector<8x64xf32>
    %c0_i32_90 = arith.constant 0 : i32
    %c8_i32_91 = arith.constant 8 : i32
    %266 = arith.muli %c0_i32_90, %c8_i32_91 : i32
    %267 = arith.index_cast %266 : i32 to index
    %c0_92 = arith.constant 0 : index
    %268 = vector.load %arg12[%267, %c0_92] : memref<64x256xf32, #tpu.memory_space<vmem>>, vector<8x256xf32>
    %269 = arith.truncf %264 : vector<8x64xf32> to vector<8x64xbf16>
    %cst_93 = arith.constant dense<0.000000e+00> : vector<8x256xf32>
    %270 = tpu.matmul %269, %4, %cst_93 {dimension_numbers = #tpu.dot_dimension_numbers<[1], [0], [0], [1], [0, 0, 1, 1], [], []>} : vector<8x64xbf16>, vector<64x256xbf16>, vector<8x256xf32> -> vector<8x256xf32>
    %271 = arith.addf %268, %270 : vector<8x256xf32>
    %272 = vector.extract_strided_slice %271 {offsets = [0, 0], sizes = [8, 128], strides = [1, 1]} : vector<8x256xf32> to vector<8x128xf32>
    %273 = arith.negf %272 : vector<8x128xf32>
    %274 = math.exp %273 : vector<8x128xf32>
    %cst_94 = arith.constant 1.000000e+00 : f32
    %275 = vector.broadcast %cst_94 : f32 to vector<8x128xf32>
    %276 = arith.addf %275, %274 : vector<8x128xf32>
    %277 = arith.divf %275, %276 : vector<8x128xf32>
    %278 = vector.extract_strided_slice %277 {offsets = [0, 0], sizes = [8, 64], strides = [1, 1]} : vector<8x128xf32> to vector<8x64xf32>
    %279 = vector.extract_strided_slice %277 {offsets = [0, 64], sizes = [8, 64], strides = [1, 1]} : vector<8x128xf32> to vector<8x64xf32>
    %280 = vector.extract_strided_slice %271 {offsets = [0, 128], sizes = [8, 64], strides = [1, 1]} : vector<8x256xf32> to vector<8x64xf32>
    %281 = math.tanh %280 : vector<8x64xf32>
    %282 = vector.extract_strided_slice %271 {offsets = [0, 192], sizes = [8, 64], strides = [1, 1]} : vector<8x256xf32> to vector<8x64xf32>
    %283 = arith.negf %282 : vector<8x64xf32>
    %284 = math.exp %283 : vector<8x64xf32>
    %cst_95 = arith.constant 1.000000e+00 : f32
    %285 = vector.broadcast %cst_95 : f32 to vector<8x64xf32>
    %286 = arith.addf %285, %284 : vector<8x64xf32>
    %287 = arith.divf %285, %286 : vector<8x64xf32>
    %288 = arith.mulf %279, %265 : vector<8x64xf32>
    %289 = arith.mulf %278, %281 : vector<8x64xf32>
    %290 = arith.addf %288, %289 : vector<8x64xf32>
    %291 = math.tanh %290 : vector<8x64xf32>
    %292 = arith.mulf %287, %291 : vector<8x64xf32>
    %c1_i32_96 = arith.constant 1 : i32
    %c8_i32_97 = arith.constant 8 : i32
    %293 = arith.muli %c1_i32_96, %c8_i32_97 : i32
    %294 = arith.index_cast %293 : i32 to index
    %c0_98 = arith.constant 0 : index
    %295 = vector.load %arg12[%294, %c0_98] : memref<64x256xf32, #tpu.memory_space<vmem>>, vector<8x256xf32>
    %296 = arith.truncf %292 : vector<8x64xf32> to vector<8x64xbf16>
    %cst_99 = arith.constant dense<0.000000e+00> : vector<8x256xf32>
    %297 = tpu.matmul %296, %4, %cst_99 {dimension_numbers = #tpu.dot_dimension_numbers<[1], [0], [0], [1], [0, 0, 1, 1], [], []>} : vector<8x64xbf16>, vector<64x256xbf16>, vector<8x256xf32> -> vector<8x256xf32>
    %298 = arith.addf %295, %297 : vector<8x256xf32>
    %299 = vector.extract_strided_slice %298 {offsets = [0, 0], sizes = [8, 128], strides = [1, 1]} : vector<8x256xf32> to vector<8x128xf32>
    %300 = arith.negf %299 : vector<8x128xf32>
    %301 = math.exp %300 : vector<8x128xf32>
    %cst_100 = arith.constant 1.000000e+00 : f32
    %302 = vector.broadcast %cst_100 : f32 to vector<8x128xf32>
    %303 = arith.addf %302, %301 : vector<8x128xf32>
    %304 = arith.divf %302, %303 : vector<8x128xf32>
    %305 = vector.extract_strided_slice %304 {offsets = [0, 0], sizes = [8, 64], strides = [1, 1]} : vector<8x128xf32> to vector<8x64xf32>
    %306 = vector.extract_strided_slice %304 {offsets = [0, 64], sizes = [8, 64], strides = [1, 1]} : vector<8x128xf32> to vector<8x64xf32>
    %307 = vector.extract_strided_slice %298 {offsets = [0, 128], sizes = [8, 64], strides = [1, 1]} : vector<8x256xf32> to vector<8x64xf32>
    %308 = math.tanh %307 : vector<8x64xf32>
    %309 = vector.extract_strided_slice %298 {offsets = [0, 192], sizes = [8, 64], strides = [1, 1]} : vector<8x256xf32> to vector<8x64xf32>
    %310 = arith.negf %309 : vector<8x64xf32>
    %311 = math.exp %310 : vector<8x64xf32>
    %cst_101 = arith.constant 1.000000e+00 : f32
    %312 = vector.broadcast %cst_101 : f32 to vector<8x64xf32>
    %313 = arith.addf %312, %311 : vector<8x64xf32>
    %314 = arith.divf %312, %313 : vector<8x64xf32>
    %315 = arith.mulf %306, %290 : vector<8x64xf32>
    %316 = arith.mulf %305, %308 : vector<8x64xf32>
    %317 = arith.addf %315, %316 : vector<8x64xf32>
    %318 = math.tanh %317 : vector<8x64xf32>
    %319 = arith.mulf %314, %318 : vector<8x64xf32>
    %c2_i32_102 = arith.constant 2 : i32
    %c8_i32_103 = arith.constant 8 : i32
    %320 = arith.muli %c2_i32_102, %c8_i32_103 : i32
    %321 = arith.index_cast %320 : i32 to index
    %c0_104 = arith.constant 0 : index
    %322 = vector.load %arg12[%321, %c0_104] : memref<64x256xf32, #tpu.memory_space<vmem>>, vector<8x256xf32>
    %323 = arith.truncf %319 : vector<8x64xf32> to vector<8x64xbf16>
    %cst_105 = arith.constant dense<0.000000e+00> : vector<8x256xf32>
    %324 = tpu.matmul %323, %4, %cst_105 {dimension_numbers = #tpu.dot_dimension_numbers<[1], [0], [0], [1], [0, 0, 1, 1], [], []>} : vector<8x64xbf16>, vector<64x256xbf16>, vector<8x256xf32> -> vector<8x256xf32>
    %325 = arith.addf %322, %324 : vector<8x256xf32>
    %326 = vector.extract_strided_slice %325 {offsets = [0, 0], sizes = [8, 128], strides = [1, 1]} : vector<8x256xf32> to vector<8x128xf32>
    %327 = arith.negf %326 : vector<8x128xf32>
    %328 = math.exp %327 : vector<8x128xf32>
    %cst_106 = arith.constant 1.000000e+00 : f32
    %329 = vector.broadcast %cst_106 : f32 to vector<8x128xf32>
    %330 = arith.addf %329, %328 : vector<8x128xf32>
    %331 = arith.divf %329, %330 : vector<8x128xf32>
    %332 = vector.extract_strided_slice %331 {offsets = [0, 0], sizes = [8, 64], strides = [1, 1]} : vector<8x128xf32> to vector<8x64xf32>
    %333 = vector.extract_strided_slice %331 {offsets = [0, 64], sizes = [8, 64], strides = [1, 1]} : vector<8x128xf32> to vector<8x64xf32>
    %334 = vector.extract_strided_slice %325 {offsets = [0, 128], sizes = [8, 64], strides = [1, 1]} : vector<8x256xf32> to vector<8x64xf32>
    %335 = math.tanh %334 : vector<8x64xf32>
    %336 = vector.extract_strided_slice %325 {offsets = [0, 192], sizes = [8, 64], strides = [1, 1]} : vector<8x256xf32> to vector<8x64xf32>
    %337 = arith.negf %336 : vector<8x64xf32>
    %338 = math.exp %337 : vector<8x64xf32>
    %cst_107 = arith.constant 1.000000e+00 : f32
    %339 = vector.broadcast %cst_107 : f32 to vector<8x64xf32>
    %340 = arith.addf %339, %338 : vector<8x64xf32>
    %341 = arith.divf %339, %340 : vector<8x64xf32>
    %342 = arith.mulf %333, %317 : vector<8x64xf32>
    %343 = arith.mulf %332, %335 : vector<8x64xf32>
    %344 = arith.addf %342, %343 : vector<8x64xf32>
    %345 = math.tanh %344 : vector<8x64xf32>
    %346 = arith.mulf %341, %345 : vector<8x64xf32>
    %c3_i32_108 = arith.constant 3 : i32
    %c8_i32_109 = arith.constant 8 : i32
    %347 = arith.muli %c3_i32_108, %c8_i32_109 : i32
    %348 = arith.index_cast %347 : i32 to index
    %c0_110 = arith.constant 0 : index
    %349 = vector.load %arg12[%348, %c0_110] : memref<64x256xf32, #tpu.memory_space<vmem>>, vector<8x256xf32>
    %350 = arith.truncf %346 : vector<8x64xf32> to vector<8x64xbf16>
    %cst_111 = arith.constant dense<0.000000e+00> : vector<8x256xf32>
    %351 = tpu.matmul %350, %4, %cst_111 {dimension_numbers = #tpu.dot_dimension_numbers<[1], [0], [0], [1], [0, 0, 1, 1], [], []>} : vector<8x64xbf16>, vector<64x256xbf16>, vector<8x256xf32> -> vector<8x256xf32>
    %352 = arith.addf %349, %351 : vector<8x256xf32>
    %353 = vector.extract_strided_slice %352 {offsets = [0, 0], sizes = [8, 128], strides = [1, 1]} : vector<8x256xf32> to vector<8x128xf32>
    %354 = arith.negf %353 : vector<8x128xf32>
    %355 = math.exp %354 : vector<8x128xf32>
    %cst_112 = arith.constant 1.000000e+00 : f32
    %356 = vector.broadcast %cst_112 : f32 to vector<8x128xf32>
    %357 = arith.addf %356, %355 : vector<8x128xf32>
    %358 = arith.divf %356, %357 : vector<8x128xf32>
    %359 = vector.extract_strided_slice %358 {offsets = [0, 0], sizes = [8, 64], strides = [1, 1]} : vector<8x128xf32> to vector<8x64xf32>
    %360 = vector.extract_strided_slice %358 {offsets = [0, 64], sizes = [8, 64], strides = [1, 1]} : vector<8x128xf32> to vector<8x64xf32>
    %361 = vector.extract_strided_slice %352 {offsets = [0, 128], sizes = [8, 64], strides = [1, 1]} : vector<8x256xf32> to vector<8x64xf32>
    %362 = math.tanh %361 : vector<8x64xf32>
    %363 = vector.extract_strided_slice %352 {offsets = [0, 192], sizes = [8, 64], strides = [1, 1]} : vector<8x256xf32> to vector<8x64xf32>
    %364 = arith.negf %363 : vector<8x64xf32>
    %365 = math.exp %364 : vector<8x64xf32>
    %cst_113 = arith.constant 1.000000e+00 : f32
    %366 = vector.broadcast %cst_113 : f32 to vector<8x64xf32>
    %367 = arith.addf %366, %365 : vector<8x64xf32>
    %368 = arith.divf %366, %367 : vector<8x64xf32>
    %369 = arith.mulf %360, %344 : vector<8x64xf32>
    %370 = arith.mulf %359, %362 : vector<8x64xf32>
    %371 = arith.addf %369, %370 : vector<8x64xf32>
    %372 = math.tanh %371 : vector<8x64xf32>
    %373 = arith.mulf %368, %372 : vector<8x64xf32>
    %c4_i32_114 = arith.constant 4 : i32
    %c8_i32_115 = arith.constant 8 : i32
    %374 = arith.muli %c4_i32_114, %c8_i32_115 : i32
    %375 = arith.index_cast %374 : i32 to index
    %c0_116 = arith.constant 0 : index
    %376 = vector.load %arg12[%375, %c0_116] : memref<64x256xf32, #tpu.memory_space<vmem>>, vector<8x256xf32>
    %377 = arith.truncf %373 : vector<8x64xf32> to vector<8x64xbf16>
    %cst_117 = arith.constant dense<0.000000e+00> : vector<8x256xf32>
    %378 = tpu.matmul %377, %4, %cst_117 {dimension_numbers = #tpu.dot_dimension_numbers<[1], [0], [0], [1], [0, 0, 1, 1], [], []>} : vector<8x64xbf16>, vector<64x256xbf16>, vector<8x256xf32> -> vector<8x256xf32>
    %379 = arith.addf %376, %378 : vector<8x256xf32>
    %380 = vector.extract_strided_slice %379 {offsets = [0, 0], sizes = [8, 128], strides = [1, 1]} : vector<8x256xf32> to vector<8x128xf32>
    %381 = arith.negf %380 : vector<8x128xf32>
    %382 = math.exp %381 : vector<8x128xf32>
    %cst_118 = arith.constant 1.000000e+00 : f32
    %383 = vector.broadcast %cst_118 : f32 to vector<8x128xf32>
    %384 = arith.addf %383, %382 : vector<8x128xf32>
    %385 = arith.divf %383, %384 : vector<8x128xf32>
    %386 = vector.extract_strided_slice %385 {offsets = [0, 0], sizes = [8, 64], strides = [1, 1]} : vector<8x128xf32> to vector<8x64xf32>
    %387 = vector.extract_strided_slice %385 {offsets = [0, 64], sizes = [8, 64], strides = [1, 1]} : vector<8x128xf32> to vector<8x64xf32>
    %388 = vector.extract_strided_slice %379 {offsets = [0, 128], sizes = [8, 64], strides = [1, 1]} : vector<8x256xf32> to vector<8x64xf32>
    %389 = math.tanh %388 : vector<8x64xf32>
    %390 = vector.extract_strided_slice %379 {offsets = [0, 192], sizes = [8, 64], strides = [1, 1]} : vector<8x256xf32> to vector<8x64xf32>
    %391 = arith.negf %390 : vector<8x64xf32>
    %392 = math.exp %391 : vector<8x64xf32>
    %cst_119 = arith.constant 1.000000e+00 : f32
    %393 = vector.broadcast %cst_119 : f32 to vector<8x64xf32>
    %394 = arith.addf %393, %392 : vector<8x64xf32>
    %395 = arith.divf %393, %394 : vector<8x64xf32>
    %396 = arith.mulf %387, %371 : vector<8x64xf32>
    %397 = arith.mulf %386, %389 : vector<8x64xf32>
    %398 = arith.addf %396, %397 : vector<8x64xf32>
    %399 = math.tanh %398 : vector<8x64xf32>
    %400 = arith.mulf %395, %399 : vector<8x64xf32>
    %c5_i32_120 = arith.constant 5 : i32
    %c8_i32_121 = arith.constant 8 : i32
    %401 = arith.muli %c5_i32_120, %c8_i32_121 : i32
    %402 = arith.index_cast %401 : i32 to index
    %c0_122 = arith.constant 0 : index
    %403 = vector.load %arg12[%402, %c0_122] : memref<64x256xf32, #tpu.memory_space<vmem>>, vector<8x256xf32>
    %404 = arith.truncf %400 : vector<8x64xf32> to vector<8x64xbf16>
    %cst_123 = arith.constant dense<0.000000e+00> : vector<8x256xf32>
    %405 = tpu.matmul %404, %4, %cst_123 {dimension_numbers = #tpu.dot_dimension_numbers<[1], [0], [0], [1], [0, 0, 1, 1], [], []>} : vector<8x64xbf16>, vector<64x256xbf16>, vector<8x256xf32> -> vector<8x256xf32>
    %406 = arith.addf %403, %405 : vector<8x256xf32>
    %407 = vector.extract_strided_slice %406 {offsets = [0, 0], sizes = [8, 128], strides = [1, 1]} : vector<8x256xf32> to vector<8x128xf32>
    %408 = arith.negf %407 : vector<8x128xf32>
    %409 = math.exp %408 : vector<8x128xf32>
    %cst_124 = arith.constant 1.000000e+00 : f32
    %410 = vector.broadcast %cst_124 : f32 to vector<8x128xf32>
    %411 = arith.addf %410, %409 : vector<8x128xf32>
    %412 = arith.divf %410, %411 : vector<8x128xf32>
    %413 = vector.extract_strided_slice %412 {offsets = [0, 0], sizes = [8, 64], strides = [1, 1]} : vector<8x128xf32> to vector<8x64xf32>
    %414 = vector.extract_strided_slice %412 {offsets = [0, 64], sizes = [8, 64], strides = [1, 1]} : vector<8x128xf32> to vector<8x64xf32>
    %415 = vector.extract_strided_slice %406 {offsets = [0, 128], sizes = [8, 64], strides = [1, 1]} : vector<8x256xf32> to vector<8x64xf32>
    %416 = math.tanh %415 : vector<8x64xf32>
    %417 = vector.extract_strided_slice %406 {offsets = [0, 192], sizes = [8, 64], strides = [1, 1]} : vector<8x256xf32> to vector<8x64xf32>
    %418 = arith.negf %417 : vector<8x64xf32>
    %419 = math.exp %418 : vector<8x64xf32>
    %cst_125 = arith.constant 1.000000e+00 : f32
    %420 = vector.broadcast %cst_125 : f32 to vector<8x64xf32>
    %421 = arith.addf %420, %419 : vector<8x64xf32>
    %422 = arith.divf %420, %421 : vector<8x64xf32>
    %423 = arith.mulf %414, %398 : vector<8x64xf32>
    %424 = arith.mulf %413, %416 : vector<8x64xf32>
    %425 = arith.addf %423, %424 : vector<8x64xf32>
    %426 = math.tanh %425 : vector<8x64xf32>
    %427 = arith.mulf %422, %426 : vector<8x64xf32>
    %c6_i32_126 = arith.constant 6 : i32
    %c8_i32_127 = arith.constant 8 : i32
    %428 = arith.muli %c6_i32_126, %c8_i32_127 : i32
    %429 = arith.index_cast %428 : i32 to index
    %c0_128 = arith.constant 0 : index
    %430 = vector.load %arg12[%429, %c0_128] : memref<64x256xf32, #tpu.memory_space<vmem>>, vector<8x256xf32>
    %431 = arith.truncf %427 : vector<8x64xf32> to vector<8x64xbf16>
    %cst_129 = arith.constant dense<0.000000e+00> : vector<8x256xf32>
    %432 = tpu.matmul %431, %4, %cst_129 {dimension_numbers = #tpu.dot_dimension_numbers<[1], [0], [0], [1], [0, 0, 1, 1], [], []>} : vector<8x64xbf16>, vector<64x256xbf16>, vector<8x256xf32> -> vector<8x256xf32>
    %433 = arith.addf %430, %432 : vector<8x256xf32>
    %434 = vector.extract_strided_slice %433 {offsets = [0, 0], sizes = [8, 128], strides = [1, 1]} : vector<8x256xf32> to vector<8x128xf32>
    %435 = arith.negf %434 : vector<8x128xf32>
    %436 = math.exp %435 : vector<8x128xf32>
    %cst_130 = arith.constant 1.000000e+00 : f32
    %437 = vector.broadcast %cst_130 : f32 to vector<8x128xf32>
    %438 = arith.addf %437, %436 : vector<8x128xf32>
    %439 = arith.divf %437, %438 : vector<8x128xf32>
    %440 = vector.extract_strided_slice %439 {offsets = [0, 0], sizes = [8, 64], strides = [1, 1]} : vector<8x128xf32> to vector<8x64xf32>
    %441 = vector.extract_strided_slice %439 {offsets = [0, 64], sizes = [8, 64], strides = [1, 1]} : vector<8x128xf32> to vector<8x64xf32>
    %442 = vector.extract_strided_slice %433 {offsets = [0, 128], sizes = [8, 64], strides = [1, 1]} : vector<8x256xf32> to vector<8x64xf32>
    %443 = math.tanh %442 : vector<8x64xf32>
    %444 = vector.extract_strided_slice %433 {offsets = [0, 192], sizes = [8, 64], strides = [1, 1]} : vector<8x256xf32> to vector<8x64xf32>
    %445 = arith.negf %444 : vector<8x64xf32>
    %446 = math.exp %445 : vector<8x64xf32>
    %cst_131 = arith.constant 1.000000e+00 : f32
    %447 = vector.broadcast %cst_131 : f32 to vector<8x64xf32>
    %448 = arith.addf %447, %446 : vector<8x64xf32>
    %449 = arith.divf %447, %448 : vector<8x64xf32>
    %450 = arith.mulf %441, %425 : vector<8x64xf32>
    %451 = arith.mulf %440, %443 : vector<8x64xf32>
    %452 = arith.addf %450, %451 : vector<8x64xf32>
    %453 = math.tanh %452 : vector<8x64xf32>
    %454 = arith.mulf %449, %453 : vector<8x64xf32>
    %c7_i32_132 = arith.constant 7 : i32
    %c8_i32_133 = arith.constant 8 : i32
    %455 = arith.muli %c7_i32_132, %c8_i32_133 : i32
    %456 = arith.index_cast %455 : i32 to index
    %c0_134 = arith.constant 0 : index
    %457 = vector.load %arg12[%456, %c0_134] : memref<64x256xf32, #tpu.memory_space<vmem>>, vector<8x256xf32>
    %458 = arith.truncf %454 : vector<8x64xf32> to vector<8x64xbf16>
    %cst_135 = arith.constant dense<0.000000e+00> : vector<8x256xf32>
    %459 = tpu.matmul %458, %4, %cst_135 {dimension_numbers = #tpu.dot_dimension_numbers<[1], [0], [0], [1], [0, 0, 1, 1], [], []>} : vector<8x64xbf16>, vector<64x256xbf16>, vector<8x256xf32> -> vector<8x256xf32>
    %460 = arith.addf %457, %459 : vector<8x256xf32>
    %461 = vector.extract_strided_slice %460 {offsets = [0, 0], sizes = [8, 128], strides = [1, 1]} : vector<8x256xf32> to vector<8x128xf32>
    %462 = arith.negf %461 : vector<8x128xf32>
    %463 = math.exp %462 : vector<8x128xf32>
    %cst_136 = arith.constant 1.000000e+00 : f32
    %464 = vector.broadcast %cst_136 : f32 to vector<8x128xf32>
    %465 = arith.addf %464, %463 : vector<8x128xf32>
    %466 = arith.divf %464, %465 : vector<8x128xf32>
    %467 = vector.extract_strided_slice %466 {offsets = [0, 0], sizes = [8, 64], strides = [1, 1]} : vector<8x128xf32> to vector<8x64xf32>
    %468 = vector.extract_strided_slice %466 {offsets = [0, 64], sizes = [8, 64], strides = [1, 1]} : vector<8x128xf32> to vector<8x64xf32>
    %469 = vector.extract_strided_slice %460 {offsets = [0, 128], sizes = [8, 64], strides = [1, 1]} : vector<8x256xf32> to vector<8x64xf32>
    %470 = math.tanh %469 : vector<8x64xf32>
    %471 = vector.extract_strided_slice %460 {offsets = [0, 192], sizes = [8, 64], strides = [1, 1]} : vector<8x256xf32> to vector<8x64xf32>
    %472 = arith.negf %471 : vector<8x64xf32>
    %473 = math.exp %472 : vector<8x64xf32>
    %cst_137 = arith.constant 1.000000e+00 : f32
    %474 = vector.broadcast %cst_137 : f32 to vector<8x64xf32>
    %475 = arith.addf %474, %473 : vector<8x64xf32>
    %476 = arith.divf %474, %475 : vector<8x64xf32>
    %477 = arith.mulf %468, %452 : vector<8x64xf32>
    %478 = arith.mulf %467, %470 : vector<8x64xf32>
    %479 = arith.addf %477, %478 : vector<8x64xf32>
    %480 = math.tanh %479 : vector<8x64xf32>
    %481 = arith.mulf %476, %480 : vector<8x64xf32>
    %c8_i32_138 = arith.constant 8 : i32
    %c0_139 = arith.constant 0 : index
    %c0_140 = arith.constant 0 : index
    %482 = vector.load %arg16[%c0_139, %c0_140] : memref<8x64xf32, #tpu.memory_space<vmem>>, vector<8x64xf32>
    tpu.vector_store %arg16[%c0_139, %c0_140], %481 {strides = array<i32>} : memref<8x64xf32, #tpu.memory_space<vmem>>, vector<8x64xf32>,
    %c0_141 = arith.constant 0 : index
    %c0_142 = arith.constant 0 : index
    %483 = vector.load %arg17[%c0_141, %c0_142] : memref<8x64xf32, #tpu.memory_space<vmem>>, vector<8x64xf32>
    tpu.vector_store %arg17[%c0_141, %c0_142], %479 {strides = array<i32>} : memref<8x64xf32, #tpu.memory_space<vmem>>, vector<8x64xf32>,
    %c0_i32_143 = arith.constant 0 : i32
    %484 = arith.cmpi eq, %arg1, %c0_i32_143 : i32
    %485 = arith.extui %484 : i1 to i32
    %c0_i32_144 = arith.constant 0 : i32
    %486 = arith.cmpi ne, %485, %c0_i32_144 : i32
    scf.if %486 {
      %c0_145 = arith.constant 0 : index
      %c0_146 = arith.constant 0 : index
      %487 = vector.load %arg9[%c0_145, %c0_146] : memref<64x128xf32, #tpu.memory_space<vmem>>, vector<64x128xf32>
      %cst_147 = arith.constant dense<0.000000e+00> : vector<8x128xf32>
      %488 = tpu.matmul %481, %487, %cst_147 {dimension_numbers = #tpu.dot_dimension_numbers<[1], [0], [0], [1], [0, 0, 1, 1], [], []>} : vector<8x64xf32>, vector<64x128xf32>, vector<8x128xf32> -> vector<8x128xf32>
      %c0_148 = arith.constant 0 : index
      %c0_149 = arith.constant 0 : index
      %489 = vector.load %arg10[%c0_148, %c0_149] : memref<1x128xf32, #tpu.memory_space<vmem>>, vector<1x128xf32>
      %490 = vector.broadcast %489 : vector<1x128xf32> to vector<8x128xf32>
      %491 = arith.addf %488, %490 : vector<8x128xf32>
      %c0_150 = arith.constant 0 : index
      %c0_151 = arith.constant 0 : index
      %492 = vector.load %arg11[%c0_150, %c0_151] : memref<8x128xf32, #tpu.memory_space<vmem>>, vector<8x128xf32>
      tpu.vector_store %arg11[%c0_150, %c0_151], %491 {strides = array<i32>} : memref<8x128xf32, #tpu.memory_space<vmem>>, vector<8x128xf32>,
    } else {
    }
    return
  }
  func.func @transform_0(%arg0: i32, %arg1: i32) -> (i32, i32) {
    %c1_i32 = arith.constant 1 : i32
    %0 = arith.muli %arg0, %c1_i32 : i32
    %1 = arith.addi %0, %arg1 : i32
    %c0_i32 = arith.constant 0 : i32
    %c0_i32_0 = arith.constant 0 : i32
    return %1, %c0_i32 : i32, i32
  }
  func.func @transform_1(%arg0: i32, %arg1: i32) -> (i32, i32) {
    %c0_i32 = arith.constant 0 : i32
    %c0_i32_0 = arith.constant 0 : i32
    %c0_i32_1 = arith.constant 0 : i32
    return %c0_i32, %c0_i32_0 : i32, i32
  }
  func.func @transform_2(%arg0: i32, %arg1: i32) -> (i32, i32) {
    %c0_i32 = arith.constant 0 : i32
    %c0_i32_0 = arith.constant 0 : i32
    %c0_i32_1 = arith.constant 0 : i32
    return %c0_i32, %c0_i32_0 : i32, i32
  }
  func.func @transform_3(%arg0: i32, %arg1: i32) -> (i32, i32) {
    %c0_i32 = arith.constant 0 : i32
    %c0_i32_0 = arith.constant 0 : i32
    %c0_i32_1 = arith.constant 0 : i32
    return %c0_i32, %c0_i32_0 : i32, i32
  }
  func.func @transform_4(%arg0: i32, %arg1: i32) -> (i32, i32) {
    %c0_i32 = arith.constant 0 : i32
    %c0_i32_0 = arith.constant 0 : i32
    %c0_i32_1 = arith.constant 0 : i32
    return %c0_i32, %c0_i32_0 : i32, i32
  }
  func.func @transform_5(%arg0: i32, %arg1: i32) -> (i32, i32) {
    %c0_i32 = arith.constant 0 : i32
    %c0_i32_0 = arith.constant 0 : i32
    %c0_i32_1 = arith.constant 0 : i32
    return %c0_i32, %c0_i32_0 : i32, i32
  }
  func.func @transform_6(%arg0: i32, %arg1: i32) -> (i32, i32) {
    %c0_i32 = arith.constant 0 : i32
    %c0_i32_0 = arith.constant 0 : i32
    %c0_i32_1 = arith.constant 0 : i32
    return %c0_i32, %c0_i32_0 : i32, i32
  }
  func.func @transform_7(%arg0: i32, %arg1: i32) -> (i32, i32) {
    %c0_i32 = arith.constant 0 : i32
    %c0_i32_0 = arith.constant 0 : i32
    %c0_i32_1 = arith.constant 0 : i32
    return %c0_i32, %c0_i32_0 : i32, i32
  }
  func.func @transform_8(%arg0: i32, %arg1: i32) -> (i32, i32) {
    %c0_i32 = arith.constant 0 : i32
    %c0_i32_0 = arith.constant 0 : i32
    %c0_i32_1 = arith.constant 0 : i32
    return %c0_i32, %c0_i32_0 : i32, i32
  }
  func.func @transform_9(%arg0: i32, %arg1: i32) -> (i32, i32) {
    %c0_i32 = arith.constant 0 : i32
    %c0_i32_0 = arith.constant 0 : i32
    return %arg0, %c0_i32 : i32, i32
  }
}

</mosaic_0001>

<bundles_post_ra>
// kernel: tpu_custom_call.1
= control target key start
LH: loop header
LB: loop body
LE: loop exit
PB: predicated region body
PF: predicated region fallthrough
CT: control target
= control target key end

     0   :  { %14 = vsyncpa [#allocation9], 0  ;;  %s3054_s0 = inlined_call_operand.vmem [shape: bf16[64,34], index: 0, kind: input, shape index: {}]   ;;  %s3055_s1 = inlined_call_operand.hbm [shape: bf16[34,256], index: 1, kind: input, shape index: {}]   ;;  %s3056_s2 = inlined_call_operand.hbm [shape: bf16[64,256], index: 2, kind: input, shape index: {}]   ;;  %s3057_s3 = inlined_call_operand.vmem [shape: f32[1,256], index: 3, kind: input, shape index: {}]   ;;  %s3058_s4 = inlined_call_operand.vmem [shape: bf16[64,256], index: 4, kind: input, shape index: {}]   ;;  %s3059_s5 = inlined_call_operand.hbm [shape: bf16[64,256], index: 5, kind: input, shape index: {}]   ;;  %s3060_s6 = inlined_call_operand.vmem [shape: f32[1,256], index: 6, kind: input, shape index: {}]   ;;  %s3061_s7 = inlined_call_operand.hbm [shape: f32[64,128], index: 7, kind: input, shape index: {}]   ;;  %s3062_s8 = inlined_call_operand.vmem [shape: f32[1,128], index: 8, kind: input, shape index: {}]   ;;  %s3063_s9 = inlined_call_operand.hbm [shape: f32[8,128], index: 9, kind: output, shape index: {}]  }
   0x1   :  { %15 = vsyncpa [#allocation12], 0 }
   0x2   :  { %16 = vsyncpa [#allocation15], 0 }
   0x3   :  { %17 = vsyncpa [#allocation10], 0  ;;  %s2431_s30 = smov [#allocation11]   ;;  %s2432_s11 = smov [#allocation8]  }
   0x4   :  { %s45_s10 = sshll.u32 %s2431_s30, 4  ;;  %s33_s12 = sshll.u32 %s2432_s11, 4  ;;  %s46_s10 = int_to_ptr.vmem [resolvable:$true] %s45_s10  ;;  %s2493_s12 = int_to_ptr.vmem [resolvable:$true] %s33_s12 }
   0x5   :  { %s2313_s15 = scalar_lea.hbm %s3056_s2, 1024 }
   0x6   :  { %p2314_p0 = scmp.ne.s32.totalorder %s3056_s2, %s2313_s15  ;;  %p2317_p1 = scmp.lt.u32.totalorder %s2313_s15, %s3056_s2 }
   0x8   :  { %p2319_p2 = pnand %p2317_p1, %p2314_p0 }
   0xa   :  { %2322 = shalt.err (!%p2319_p2)
}
   0xb   :  { %s2323_s20 = scalar_lea.vmem %s46_s10, 1024  ;;  %p2328_p4 = scmp.lt.s32.totalorder %s46_s10, %s46_s10 }
   0xc   :  { %p2324_p3 = scmp.ne.s32.totalorder %s46_s10, %s2323_s20  ;;  %p2329_p5 = scmp.lt.s32.totalorder %s2323_s20, %s2323_s20 }
   0xe   :  { %p2330_p6 = por %p2329_p5, %p2328_p4 }
  0x10   :  { %p2331_p7 = pnand %p2330_p6, %p2324_p3 }
  0x12   :  { %2334 = shalt.err (!%p2331_p7)
}
  0x13   :  { %s2433_s21 = smov 128   ;;  %s2434_s22 = smov 8  }
  0x14   :  { %51 = dma.hbm_to_vmem [thread:$0]  %s3056_s2, 1024, %s46_s10, [#allocation12], %s2433_s21, %s2433_s21, %s2434_s22  }
  0x15   :  { %s2335_s27 = scalar_lea.hbm %s3055_s1, 640 }
  0x16   :  { %p2336_p8 = scmp.ne.s32.totalorder %s3055_s1, %s2335_s27  ;;  %p2339_p9 = scmp.lt.u32.totalorder %s2335_s27, %s3055_s1 }
  0x18   :  { %p2341_p10 = pnand %p2339_p9, %p2336_p8 }
  0x1a   :  { %2344 = shalt.err (!%p2341_p10)
}
  0x1b   :  { %s2345_s13 = scalar_lea.vmem %s2493_s12, 640  ;;  %p2350_p12 = scmp.lt.s32.totalorder %s2493_s12, %s2493_s12 }
  0x1c   :  { %p2346_p11 = scmp.ne.s32.totalorder %s2493_s12, %s2345_s13  ;;  %p2351_p13 = scmp.lt.s32.totalorder %s2345_s13, %s2345_s13 }
  0x1e   :  { %p2352_p0 = por %p2351_p13, %p2350_p12 }
  0x20   :  { %p2353_p1 = pnand %p2352_p0, %p2346_p11 }
  0x22   :  { %2356 = shalt.err (!%p2353_p1)
}
  0x23   :  { %39 = dma.hbm_to_vmem [thread:$0]  %s3055_s1, 640, %s2493_s12, [#allocation9], %s2433_s21, %s2433_s21, %s2434_s22  }
  0x24   :  { %s2435_s14 = smov [#allocation13]   ;;  %s2436_s16 = smov [#allocation14]  }
  0x25   :  { %s61_s15 = sshll.u32 %s2435_s14, 4  ;;  %s75_s17 = sshll.u32 %s2436_s16, 4  ;;  %s62_s15 = int_to_ptr.vmem [resolvable:$true] %s61_s15  ;;  %s2530_s17 = int_to_ptr.vmem [resolvable:$true] %s75_s17 }
  0x26   :  { %s2357_s20 = scalar_lea.hbm %s3059_s5, 1024 }
  0x27   :  { %p2358_p2 = scmp.ne.s32.totalorder %s3059_s5, %s2357_s20  ;;  %p2361_p3 = scmp.lt.u32.totalorder %s2357_s20, %s3059_s5 }
  0x29   :  { %p2363_p4 = pnand %p2361_p3, %p2358_p2 }
  0x2b   :  { %2366 = shalt.err (!%p2363_p4)
}
  0x2c   :  { %s2367_s1 = scalar_lea.vmem %s62_s15, 1024  ;;  %p2372_p6 = scmp.lt.s32.totalorder %s62_s15, %s62_s15 }
  0x2d   :  { %p2368_p5 = scmp.ne.s32.totalorder %s62_s15, %s2367_s1  ;;  %p2373_p7 = scmp.lt.s32.totalorder %s2367_s1, %s2367_s1 }
  0x2f   :  { %p2374_p8 = por %p2373_p7, %p2372_p6 }
  0x31   :  { %p2375_p9 = pnand %p2374_p8, %p2368_p5 }
  0x33   :  { %2378 = shalt.err (!%p2375_p9)
}
  0x34   :  { %67 = dma.hbm_to_vmem [thread:$0]  %s3059_s5, 1024, %s62_s15, [#allocation12], %s2433_s21, %s2433_s21, %s2434_s22  }
  0x35   :  { %s2379_s30 = scalar_lea.hbm %s3061_s7, 1024 }
  0x36   :  { %p2380_p10 = scmp.ne.s32.totalorder %s3061_s7, %s2379_s30  ;;  %p2383_p11 = scmp.lt.u32.totalorder %s2379_s30, %s3061_s7 }
  0x38   :  { %p2385_p12 = pnand %p2383_p11, %p2380_p10 }
  0x3a   :  { %2388 = shalt.err (!%p2385_p12)
}
  0x3b   :  { %s2389_s14 = scalar_lea.vmem %s2530_s17, 1024  ;;  %p2394_p0 = scmp.lt.s32.totalorder %s2530_s17, %s2530_s17 }
  0x3c   :  { %p2390_p13 = scmp.ne.s32.totalorder %s2530_s17, %s2389_s14  ;;  %p2395_p1 = scmp.lt.s32.totalorder %s2389_s14, %s2389_s14 }
  0x3e   :  { %p2396_p2 = por %p2395_p1, %p2394_p0 }
  0x40   :  { %p2397_p3 = pnand %p2396_p2, %p2390_p13 }
  0x42   :  { %2400 = shalt.err (!%p2397_p3)
}
  0x43   :  { %81 = dma.hbm_to_vmem [thread:$0]  %s3061_s7, 1024, %s2530_s17, [#allocation15], %s2433_s21, %s2433_s21, %s2434_s22  }
  0x44   :  { %2423 = dma.done.wait [#allocation9], 640  }
  0x45   :  { %2424 = vsyncadd [#allocation9], 4294966656 }
  0x46   :  { %2425 = dma.done.wait [#allocation12], 2048  }
  0x47   :  { %2426 = vsyncadd [#allocation12], 4294965248 }
  0x48   :  { %2427 = dma.done.wait [#allocation15], 1024  }
  0x49   :  { %2428 = vsyncadd [#allocation15], 4294966272  ;;  %vm115_vm0 = vcmask 523264   ;;  %v2437_v0 = vmov 0   ;;  %v2438_v1 = vmov 0.0   ;;  %vm219_vm1 = vcmask 1040384  }
  0x4a   :  { %258 = vmatprep.mubr.bf16.mxu0 %v2437_v0  ;;  %396 = vmatprep.mubr.bf16.mxu1 %v2437_v0  ;;  %116 = vst.msk [vmem:[#allocation4] sm:$0xff] %vm115_vm0, %v2438_v1  ;;  %117 = vst.msk [vmem:[#allocation5] sm:$0xff] %vm115_vm0, %v2438_v1  ;;  %v2074_v2 = vld [vmem:[#allocation8 + $0x4] ss:$8 sps:$4 sm:$0xff]   ;;  %v2078_v4 = vld [vmem:[#allocation8] ss:$8 sps:$4 sm:$0xff]   ;;  %v151_v22 = vlaneseq }
  0x4b   :  { %118 = vst.msk [vmem:[#allocation6] sm:$0xff] %vm115_vm0, %v2438_v1  ;;  %119 = vst.msk [vmem:[#allocation7] sm:$0xff] %vm115_vm0, %v2438_v1  ;;  %v2577_v3 = vld [vmem:[#allocation11 + $0x4] ss:$8 sps:$4 sm:$0xff]   ;;  %226 = vmatprep.subr.bf16.mxu0 %v2074_v2  ;;  %v2579_v5 = vld [vmem:[#allocation11] ss:$8 sps:$4 sm:$0xff]  }
  0x4c   :  { %364 = vmatprep.subr.bf16.mxu1 %v2577_v3  ;;  %v2080_v6 = vld [vmem:[#allocation8 + $0x14] ss:$8 sps:$4 sm:$0xff]   ;;  %227 = vmatpush1.bf16.msra.mxu0 %v2078_v4  ;;  %v2084_v8 = vld [vmem:[#allocation8 + $0x10] ss:$8 sps:$4 sm:$0xff]   ;;  %v148_v10 = vld [vmem:[#allocation8 + $0x20] sm:$0x11] }
  0x4d   :  { %365 = vmatpush1.bf16.msra.mxu1 %v2579_v5  ;;  %v2583_v7 = vld [vmem:[#allocation11 + $0x14] ss:$8 sps:$4 sm:$0xff]   ;;  %228 = vmatprep.subr.bf16.mxu0 %v2080_v6  ;;  %v2585_v9 = vld [vmem:[#allocation11 + $0x10] ss:$8 sps:$4 sm:$0xff]   ;;  %v1938_v11 = vcombine.high %v148_v10, %v148_v10  ;;  %v2588_v12 = vld [vmem:[#allocation11 + $0x24] ss:$8 sps:$4 sm:$0xff]   ;;  %v1937_v13 = vcombine.low %v148_v10, %v148_v10 }
  0x4e   :  { %366 = vmatprep.subr.bf16.mxu1 %v2583_v7  ;;  %v2591_v14 = vld [vmem:[#allocation11 + $0x20] ss:$8 sps:$4 sm:$0xff]   ;;  %v2091_v16 = vld [vmem:[%s3054_s0] sm:$0xff]   ;;  %s2439_s22 = smov 64   ;;  %vm206_vm2 = vcmask 277504   ;;  %v2627_v23 = vshrl.u32 %v151_v22, 7 }
  0x4f   :  { %v221_v15 = vsel %vm219_vm1, %v1937_v13, 0  ;;  %v2597_v17 = vld [vmem:[#allocation11 + $0x34] ss:$8 sps:$4 sm:$0xff]   ;;  %v2599_v19 = vld [vmem:[#allocation11 + $0x30] ss:$8 sps:$4 sm:$0xff]   ;;  %vm2441_vm3 = vmmov 0  }
  0x50   :  { %229 = vmatpush1.bf16.msra.mxu0 %v2084_v8  ;;  %v153_v24 = vsub.s32 0, %v2627_v23  ;;  %v149_v25 = vld [vmem:[%s3057_s3] sm:$0x3]  ;;  %v157_v26 = vsub.s32 1, %v2627_v23  ;;  %s2442_s16 = smov [#allocation16]  }
  0x51   :  { %367 = vmatpush1.bf16.msra.mxu1 %v2585_v9  ;;  %1939 = vmatprep.subr.msk.bf16.mxu0 %vm219_vm1, %v1938_v11  ;;  %v316_v18 = vld [vmem:[#allocation5] sm:$0xff]  ;;  %v315_v20 = vld [vmem:[#allocation4] sm:$0xff]  ;;  %s1912_s17 = sshll.u32 %s2442_s16, 4  ;;  %s1913_s17 = int_to_ptr.vmem [resolvable:$true] %s1912_s17 }
  0x52   :  { %368 = vmatprep.subr.bf16.mxu1 %v2588_v12  ;;  %421 = vrot.lane.b32.xlu0 %v316_v18, %s2439_s22  ;;  %v319_v21 = vpack.c.bf16 %v315_v20, %v315_v20  ;;  %v2636_v27 = vrot.slane %v149_v25, %v153_v24  ;;  %v2640_v28 = vrot.slane %v149_v25, %v157_v26  ;;  %v2095_v18 = vld [vmem:[%s3054_s0 + $0x8] sm:$0xff]   ;;  %v2096_v20 = vld [vmem:[%s3054_s0 + $0x10] sm:$0xff]   ;;  %p2406_p5 = scmp.lt.s32.totalorder %s1913_s17, %s1913_s17 }
  0x54   :  { %231 = vmatpush1.bf16.msra.mxu0 %v221_v15 }
  0x55   :  { %369 = vmatpush1.bf16.msra.mxu1 %v2591_v14  ;;  %526 = vmatprep.subr.bf16.mxu0 %v2577_v3 }
  0x56   :  { %370 = vmatprep.subr.bf16.mxu1 %v2597_v17 }
  0x57   :  { %1940 = vmatmul.mubr.msk.bf16.vlgmr.msra.gmra.mrb[0].mxu0 %vm206_vm2, %v2091_v16 }
  0x58   :  { %527 = vmatpush1.bf16.msra.mxu0 %v2579_v5  ;;  %268 = vmatprep.mubr.bf16.mxu0 %v2437_v0 }
  0x59   :  { %371 = vmatpush1.bf16.msra.mxu1 %v2599_v19  ;;  %528 = vmatprep.subr.bf16.mxu0 %v2583_v7 }
  0x5a   :  { %447 = vmatprep.subr.bf16.mxu1 %v2577_v3 }
  0x5c   :  { %1952 = vmatmul.mubr.msk.bf16.vlgmr.msra.gmra.mrb[0].mxu1 %vm115_vm0, %v319_v21  ;;  %529 = vmatpush1.bf16.msra.mxu0 %v2585_v9  ;;  %v2097_v21 = vld [vmem:[%s3054_s0 + $0x18] sm:$0xff]  }
  0x5d   :  { %448 = vmatpush1.bf16.msra.mxu1 %v2579_v5  ;;  %479 = vmatprep.mubr.bf16.mxu1 %v2437_v0 }
  0x5e   :  { %449 = vmatprep.subr.bf16.mxu1 %v2583_v7  ;;  %530 = vmatprep.subr.bf16.mxu0 %v2588_v12 }
  0x5f   :  { %1941 = vmatmul.mubr.msk.bf16.gmra.mrb[4].mxu0 %vm206_vm2, %v2095_v18 }
  0x60   :  { %531 = vmatpush1.bf16.msra.mxu0 %v2591_v14  ;;  %278 = vmatprep.mubr.bf16.mxu0 %v2437_v0 }
  0x61   :  { %450 = vmatpush1.bf16.msra.mxu1 %v2585_v9  ;;  %532 = vmatprep.subr.bf16.mxu0 %v2597_v17 }
  0x62   :  { %451 = vmatprep.subr.bf16.mxu1 %v2588_v12 }
  0x64   :  { %533 = vmatpush1.bf16.msra.mxu0 %v2599_v19 }
  0x65   :  { %452 = vmatpush1.bf16.msra.mxu1 %v2591_v14  ;;  %684 = vmatprep.subr.bf16.mxu0 %v2577_v3 }
  0x66   :  { %453 = vmatprep.subr.bf16.mxu1 %v2597_v17 }
  0x67   :  { %1942 = vmatmul.mubr.msk.bf16.gmra.mrb[8].mxu0 %vm206_vm2, %v2096_v20 }
  0x68   :  { %288 = vmatprep.mubr.bf16.mxu0 %v2437_v0 }
  0x69   :  { %454 = vmatpush1.bf16.msra.mxu1 %v2599_v19 }
  0x6a   :  { %605 = vmatprep.subr.bf16.mxu1 %v2577_v3 }
  0x6f   :  { %1943 = vmatmul.mubr.msk.bf16.gmra.mrb[12].mxu0 %vm206_vm2, %v2097_v21 }
  0x70   :  { %558 = vmatprep.mubr.bf16.mxu0 %v2437_v0 }
  0xc4   :  { %v422_v49 = vpop.permute.xlu0 %421 }
 0x12a   :  { %v260_v29 = vpop.f32.mrb[0].mxu0 }
 0x12b   :  { %v261_v30 = vadd.f32 %v260_v29, %v2636_v27  ;;  %v262_v31 = vpop.f32.mrb[1].mxu0 }
 0x12c   :  { %v263_v32 = vadd.f32 %v262_v31, %v2640_v28  ;;  %v264_v33 = vpop.f32.mrb[2].mxu0 }
 0x12d   :  { %v266_v34 = vpop.f32.mrb[3].mxu0  ;;  %v265_v59 = vadd.f32 %v264_v33, %v2636_v27 }
 0x12e   :  { %v267_v60 = vadd.f32 %v266_v34, %v2640_v28 }
 0x12f   :  { %v398_v35 = vpop.f32.mrb[0].mxu1 }
 0x130   :  { %v405_v36 = vadd.f32 %v398_v35, %v261_v30  ;;  %v400_v37 = vpop.f32.mrb[1].mxu1 }
 0x131   :  { %v406_v38 = vadd.f32 %v400_v37, %v263_v32  ;;  %v402_v39 = vpop.f32.mrb[2].mxu1 }
 0x132   :  { %v1953_v40 = vmul.f32 -1.442695, %v405_v36  ;;  %v403_v41 = vpop.f32.mrb[3].mxu1  ;;  %v270_v37 = vpop.f32.mrb[4].mxu0 }
 0x133   :  { %v1954_v47 = vmul.f32 -1.442695, %v406_v38 }
 0x134   :  { %2121 = vpow2.f32 %v1953_v40 }
 0x135   :  { %2123 = vtanh.f32 %v406_v38  ;;  %v272_v38 = vpop.f32.mrb[5].mxu0 }
 0x136   :  { %v2683_v39 = vpop.f32.mrb[6].mxu0 }
 0x137   :  { %v2685_v40 = vpop.f32.mrb[7].mxu0 }
 0x13a   :  { %v2687_v41 = vpop.f32.mrb[8].mxu0 }
 0x13e   :  { %v2122_v42 = vpop.eup %2121 }
 0x13f   :  { %v410_v43 = vadd.f32 1.0, %v2122_v42  ;;  %v2124_v44 = vpop.eup %2123  ;;  %v2689_v42 = vpop.f32.mrb[9].mxu0 }
 0x141   :  { %2125 = vrcp.f32 %v410_v43  ;;  %v2691_v43 = vpop.f32.mrb[10].mxu0 }
 0x142   :  { %2127 = vpow2.f32 %v1954_v47 }
 0x14b   :  { %v2126_v45 = vpop.eup %2125 }
 0x14c   :  { %v425_v46 = vmul.f32 %v2126_v45, %v2124_v44  ;;  %v2128_v48 = vpop.eup %2127  ;;  %v424_v51 = vmul.f32 %v2126_v45, %v422_v49  ;;  %v2693_v44 = vpop.f32.mrb[11].mxu0 }
 0x14d   :  { %v417_v50 = vadd.f32 1.0, %v2128_v48  ;;  %v2695_v45 = vpop.f32.mrb[12].mxu0 }
 0x14e   :  { %427 = vrot.lane.b32.xlu0 %v425_v46, %s2439_s22  ;;  %v2697_v46 = vpop.f32.mrb[13].mxu0 }
 0x14f   :  { %2129 = vrcp.f32 %v417_v50  ;;  %v2699_v47 = vpop.f32.mrb[14].mxu0  ;;  %v271_v50 = vadd.f32 %v270_v37, %v2636_v27 }
 0x150   :  { %v2701_v48 = vpop.f32.mrb[15].mxu0 }
 0x159   :  { %v2130_v54 = vpop.eup %2129 }
 0x1c0   :  { %v428_v52 = vpop.permute.xlu0 %427 }
 0x1c1   :  { %v430_v53 = vadd.f32 %v428_v52, %v424_v51  ;;  %v273_v51 = vadd.f32 %v272_v38, %v2640_v28 }
 0x1c3   :  { %2131 = vtanh.f32 %v430_v53 }
 0x1cd   :  { %v2132_v55 = vpop.eup %2131 }
 0x1ce   :  { %v2645_v56 = vmul.f32 %v2132_v55, %v2130_v54 }
 0x1d0   :  { %v440_v57 = vpack.c.bf16 %v2645_v56, %v2645_v56 }
 0x1d2   :  { %442 = vrot.lane.b32.xlu1 %v440_v57, %s2439_s22 }
 0x244   :  { %v443_v58 = vpop.permute.xlu1 %442 }
 0x245   :  { %1955 = vmatmul.mubr.msk.bf16.vlgmr.msra.gmra.mrb[4].mxu1 %vm115_vm0, %v443_v58 }
 0x246   :  { %606 = vmatpush1.bf16.msra.mxu1 %v2579_v5  ;;  %637 = vmatprep.mubr.bf16.mxu1 %v2437_v0 }
 0x247   :  { %607 = vmatprep.subr.bf16.mxu1 %v2583_v7 }
 0x24a   :  { %608 = vmatpush1.bf16.msra.mxu1 %v2585_v9 }
 0x24b   :  { %609 = vmatprep.subr.bf16.mxu1 %v2588_v12 }
 0x24e   :  { %610 = vmatpush1.bf16.msra.mxu1 %v2591_v14 }
 0x24f   :  { %611 = vmatprep.subr.bf16.mxu1 %v2597_v17 }
 0x252   :  { %612 = vmatpush1.bf16.msra.mxu1 %v2599_v19 }
 0x253   :  { %763 = vmatprep.subr.bf16.mxu1 %v2577_v3 }
 0x318   :  { %v481_v61 = vpop.f32.mrb[4].mxu1 }
 0x319   :  { %v488_v62 = vadd.f32 %v481_v61, %v265_v59  ;;  %v483_v63 = vpop.f32.mrb[5].mxu1 }
 0x31a   :  { %v489_v2 = vadd.f32 %v483_v63, %v267_v60  ;;  %v485_v4 = vpop.f32.mrb[6].mxu1 }
 0x31b   :  { %v1956_v6 = vmul.f32 -1.442695, %v488_v62  ;;  %v486_v8 = vpop.f32.mrb[7].mxu1 }
 0x31c   :  { %v1957_v22 = vmul.f32 -1.442695, %v489_v2 }
 0x31d   :  { %2133 = vpow2.f32 %v1956_v6 }
 0x31e   :  { %2135 = vtanh.f32 %v489_v2 }
 0x327   :  { %v2134_v10 = vpop.eup %2133 }
 0x328   :  { %v493_v11 = vadd.f32 1.0, %v2134_v10  ;;  %v2136_v13 = vpop.eup %2135 }
 0x32a   :  { %2137 = vrcp.f32 %v493_v11 }
 0x32b   :  { %2139 = vpow2.f32 %v1957_v22  ;;  %v275_v22 = vadd.f32 %v2683_v39, %v2636_v27 }
 0x334   :  { %v2138_v15 = vpop.eup %2137 }
 0x335   :  { %v504_v16 = vmul.f32 %v2138_v15, %v2136_v13  ;;  %v2140_v25 = vpop.eup %2139  ;;  %v503_v30 = vmul.f32 %v2138_v15, %v430_v53 }
 0x336   :  { %v500_v29 = vadd.f32 1.0, %v2140_v25  ;;  %v277_v25 = vadd.f32 %v2685_v40, %v2640_v28 }
 0x337   :  { %506 = vrot.lane.b32.xlu1 %v504_v16, %s2439_s22 }
 0x338   :  { %2141 = vrcp.f32 %v500_v29 }
 0x342   :  { %v2142_v33 = vpop.eup %2141 }
 0x3a9   :  { %v507_v31 = vpop.permute.xlu1 %506 }
 0x3aa   :  { %v509_v32 = vadd.f32 %v507_v31, %v503_v30 }
 0x3ac   :  { %2143 = vtanh.f32 %v509_v32 }
 0x3b6   :  { %v2144_v34 = vpop.eup %2143 }
 0x3b7   :  { %v2678_v35 = vmul.f32 %v2144_v34, %v2142_v33 }
 0x3b9   :  { %v519_v36 = vpack.c.bf16 %v2678_v35, %v2678_v35 }
 0x3bb   :  { %521 = vrot.lane.b32.xlu0 %v519_v36, %s2439_s22 }
 0x42d   :  { %v522_v49 = vpop.permute.xlu0 %521 }
 0x42e   :  { %1958 = vmatmul.mubr.msk.bf16.vlgmr.msra.gmra.mrb[16].mxu0 %vm115_vm0, %v522_v49 }
 0x42f   :  { %685 = vmatpush1.bf16.msra.mxu0 %v2579_v5  ;;  %716 = vmatprep.mubr.bf16.mxu0 %v2437_v0 }
 0x430   :  { %686 = vmatprep.subr.bf16.mxu0 %v2583_v7 }
 0x433   :  { %687 = vmatpush1.bf16.msra.mxu0 %v2585_v9 }
 0x434   :  { %688 = vmatprep.subr.bf16.mxu0 %v2588_v12 }
 0x437   :  { %689 = vmatpush1.bf16.msra.mxu0 %v2591_v14 }
 0x438   :  { %690 = vmatprep.subr.bf16.mxu0 %v2597_v17 }
 0x43b   :  { %691 = vmatpush1.bf16.msra.mxu0 %v2599_v19 }
 0x43c   :  { %842 = vmatprep.subr.bf16.mxu0 %v2577_v3 }
 0x501   :  { %v560_v52 = vpop.f32.mrb[16].mxu0 }
 0x502   :  { %v567_v53 = vadd.f32 %v560_v52, %v271_v50  ;;  %v562_v54 = vpop.f32.mrb[17].mxu0 }
 0x503   :  { %v568_v55 = vadd.f32 %v562_v54, %v273_v51  ;;  %v564_v57 = vpop.f32.mrb[18].mxu0 }
 0x504   :  { %v1959_v58 = vmul.f32 -1.442695, %v567_v53  ;;  %v565_v59 = vpop.f32.mrb[19].mxu0 }
 0x505   :  { %v1960_v4 = vmul.f32 -1.442695, %v568_v55 }
 0x506   :  { %2145 = vpow2.f32 %v1959_v58 }
 0x507   :  { %2147 = vtanh.f32 %v568_v55 }
 0x510   :  { %v2146_v60 = vpop.eup %2145 }
 0x511   :  { %v572_v61 = vadd.f32 1.0, %v2146_v60  ;;  %v2148_v62 = vpop.eup %2147 }
 0x513   :  { %2149 = vrcp.f32 %v572_v61  ;;  %v281_v61 = vadd.f32 %v2687_v41, %v2636_v27 }
 0x514   :  { %2151 = vpow2.f32 %v1960_v4 }
 0x51d   :  { %v2150_v63 = vpop.eup %2149 }
 0x51e   :  { %v583_v2 = vmul.f32 %v2150_v63, %v2148_v62  ;;  %v2152_v6 = vpop.eup %2151  ;;  %v582_v10 = vmul.f32 %v2150_v63, %v509_v32  ;;  %v283_v62 = vadd.f32 %v2689_v42, %v2640_v28 }
 0x51f   :  { %v579_v8 = vadd.f32 1.0, %v2152_v6 }
 0x520   :  { %585 = vrot.lane.b32.xlu1 %v583_v2, %s2439_s22 }
 0x521   :  { %2153 = vrcp.f32 %v579_v8 }
 0x52b   :  { %v2154_v15 = vpop.eup %2153 }
 0x592   :  { %v586_v11 = vpop.permute.xlu1 %585 }
 0x593   :  { %v588_v13 = vadd.f32 %v586_v11, %v582_v10 }
 0x595   :  { %2155 = vtanh.f32 %v588_v13 }
 0x59f   :  { %v2156_v16 = vpop.eup %2155 }
 0x5a0   :  { %v2716_v18 = vmul.f32 %v2156_v16, %v2154_v15 }
 0x5a2   :  { %v598_v20 = vpack.c.bf16 %v2716_v18, %v2716_v18 }
 0x5a4   :  { %600 = vrot.lane.b32.xlu0 %v598_v20, %s2439_s22 }
 0x616   :  { %v601_v21 = vpop.permute.xlu0 %600 }
 0x617   :  { %1961 = vmatmul.mubr.msk.bf16.vlgmr.msra.gmra.mrb[8].mxu1 %vm115_vm0, %v601_v21 }
 0x618   :  { %764 = vmatpush1.bf16.msra.mxu1 %v2579_v5  ;;  %795 = vmatprep.mubr.bf16.mxu1 %v2437_v0 }
 0x619   :  { %765 = vmatprep.subr.bf16.mxu1 %v2583_v7 }
 0x61c   :  { %766 = vmatpush1.bf16.msra.mxu1 %v2585_v9 }
 0x61d   :  { %767 = vmatprep.subr.bf16.mxu1 %v2588_v12 }
 0x620   :  { %768 = vmatpush1.bf16.msra.mxu1 %v2591_v14 }
 0x621   :  { %769 = vmatprep.subr.bf16.mxu1 %v2597_v17 }
 0x624   :  { %770 = vmatpush1.bf16.msra.mxu1 %v2599_v19 }
 0x625   :  { %921 = vmatprep.subr.bf16.mxu1 %v2577_v3 }
 0x6ea   :  { %v639_v29 = vpop.f32.mrb[8].mxu1 }
 0x6eb   :  { %v646_v30 = vadd.f32 %v639_v29, %v275_v22  ;;  %v641_v31 = vpop.f32.mrb[9].mxu1 }
 0x6ec   :  { %v647_v32 = vadd.f32 %v641_v31, %v277_v25  ;;  %v643_v33 = vpop.f32.mrb[10].mxu1 }
 0x6ed   :  { %v1962_v34 = vmul.f32 -1.442695, %v646_v30  ;;  %v644_v36 = vpop.f32.mrb[11].mxu1 }
 0x6ee   :  { %v1963_v39 = vmul.f32 -1.442695, %v647_v32 }
 0x6ef   :  { %2157 = vpow2.f32 %v1962_v34 }
 0x6f0   :  { %2159 = vtanh.f32 %v647_v32 }
 0x6f9   :  { %v2158_v37 = vpop.eup %2157 }
 0x6fa   :  { %v651_v38 = vadd.f32 1.0, %v2158_v37  ;;  %v2160_v49 = vpop.eup %2159  ;;  %v285_v37 = vadd.f32 %v2691_v43, %v2636_v27 }
 0x6fc   :  { %2161 = vrcp.f32 %v651_v38 }
 0x6fd   :  { %2163 = vpow2.f32 %v1963_v39 }
 0x706   :  { %v2162_v3 = vpop.eup %2161 }
 0x707   :  { %v662_v50 = vmul.f32 %v2162_v3, %v2160_v49  ;;  %v2164_v40 = vpop.eup %2163  ;;  %v661_v52 = vmul.f32 %v2162_v3, %v588_v13 }
 0x708   :  { %v658_v51 = vadd.f32 1.0, %v2164_v40 }
 0x709   :  { %664 = vrot.lane.b32.xlu1 %v662_v50, %s2439_s22 }
 0x70a   :  { %2165 = vrcp.f32 %v658_v51 }
 0x714   :  { %v2166_v55 = vpop.eup %2165 }
 0x77b   :  { %v665_v53 = vpop.permute.xlu1 %664 }
 0x77c   :  { %v667_v54 = vadd.f32 %v665_v53, %v661_v52 }
 0x77e   :  { %2167 = vtanh.f32 %v667_v54 }
 0x788   :  { %v2168_v57 = vpop.eup %2167 }
 0x789   :  { %v2736_v58 = vmul.f32 %v2168_v57, %v2166_v55 }
 0x78b   :  { %v677_v59 = vpack.c.bf16 %v2736_v58, %v2736_v58 }
 0x78d   :  { %679 = vrot.lane.b32.xlu0 %v677_v59, %s2439_s22 }
 0x7ff   :  { %v680_v60 = vpop.permute.xlu0 %679 }
 0x800   :  { %1964 = vmatmul.mubr.msk.bf16.vlgmr.msra.gmra.mrb[20].mxu0 %vm115_vm0, %v680_v60 }
 0x801   :  { %843 = vmatpush1.bf16.msra.mxu0 %v2579_v5  ;;  %874 = vmatprep.mubr.bf16.mxu0 %v2437_v0 }
 0x802   :  { %844 = vmatprep.subr.bf16.mxu0 %v2583_v7 }
 0x805   :  { %845 = vmatpush1.bf16.msra.mxu0 %v2585_v9 }
 0x806   :  { %846 = vmatprep.subr.bf16.mxu0 %v2588_v12 }
 0x809   :  { %847 = vmatpush1.bf16.msra.mxu0 %v2591_v14 }
 0x80a   :  { %848 = vmatprep.subr.bf16.mxu0 %v2597_v17 }
 0x80d   :  { %849 = vmatpush1.bf16.msra.mxu0 %v2599_v19 }
 0x8d3   :  { %v718_v63 = vpop.f32.mrb[20].mxu0 }
 0x8d4   :  { %v725_v2 = vadd.f32 %v718_v63, %v281_v61  ;;  %v720_v4 = vpop.f32.mrb[21].mxu0  ;;  %v293_v63 = vadd.f32 %v2697_v46, %v2640_v28  ;;  %v2100_v46 = vld [vmem:[%s3058_s4 + $0x4] ss:$8 sps:$4 sm:$0xff]  }
 0x8d5   :  { %v726_v6 = vadd.f32 %v720_v4, %v283_v62  ;;  %v722_v8 = vpop.f32.mrb[22].mxu0  ;;  %v291_v62 = vadd.f32 %v2695_v45, %v2636_v27  ;;  %v2098_v45 = vld [vmem:[%s3058_s4] ss:$8 sps:$4 sm:$0xff]   ;;  %1081 = vmatprep.subr.bf16.mxu0 %v2100_v46 }
 0x8d6   :  { %v1965_v10 = vmul.f32 -1.442695, %v725_v2  ;;  %v723_v11 = vpop.f32.mrb[23].mxu0 }
 0x8d7   :  { %v1966_v41 = vmul.f32 -1.442695, %v726_v6 }
 0x8d8   :  { %2169 = vpow2.f32 %v1965_v10 }
 0x8d9   :  { %2171 = vtanh.f32 %v726_v6 }
 0x8e2   :  { %v2170_v13 = vpop.eup %2169 }
 0x8e3   :  { %v730_v15 = vadd.f32 1.0, %v2170_v13  ;;  %v2172_v16 = vpop.eup %2171 }
 0x8e5   :  { %2173 = vrcp.f32 %v730_v15 }
 0x8e6   :  { %2175 = vpow2.f32 %v1966_v41 }
 0x8ef   :  { %v2174_v20 = vpop.eup %2173 }
 0x8f0   :  { %v741_v21 = vmul.f32 %v2174_v20, %v2172_v16  ;;  %v2176_v42 = vpop.eup %2175  ;;  %v740_v25 = vmul.f32 %v2174_v20, %v667_v54 }
 0x8f1   :  { %v737_v22 = vadd.f32 1.0, %v2176_v42  ;;  %v2794_v42 = vld [vmem:[#allocation13 + $0x4] ss:$8 sps:$4 sm:$0xff]  }
 0x8f2   :  { %743 = vrot.lane.b32.xlu1 %v741_v21, %s2439_s22 }
 0x8f3   :  { %2177 = vrcp.f32 %v737_v22 }
 0x8fd   :  { %v2178_v31 = vpop.eup %2177 }
 0x964   :  { %v744_v29 = vpop.permute.xlu1 %743 }
 0x965   :  { %v746_v30 = vadd.f32 %v744_v29, %v740_v25 }
 0x967   :  { %2179 = vtanh.f32 %v746_v30 }
 0x971   :  { %v2180_v32 = vpop.eup %2179 }
 0x972   :  { %v2755_v33 = vmul.f32 %v2180_v32, %v2178_v31 }
 0x974   :  { %v756_v34 = vpack.c.bf16 %v2755_v33, %v2755_v33 }
 0x976   :  { %758 = vrot.lane.b32.xlu0 %v756_v34, %s2439_s22  ;;  %v2104_v34 = vld [vmem:[%s3058_s4 + $0x10] ss:$8 sps:$4 sm:$0xff]  }
 0x9e8   :  { %v759_v36 = vpop.permute.xlu0 %758 }
 0x9e9   :  { %1967 = vmatmul.mubr.msk.bf16.vlgmr.msra.gmra.mrb[12].mxu1 %vm115_vm0, %v759_v36  ;;  %v2106_v36 = vld [vmem:[%s3058_s4 + $0x14] ss:$8 sps:$4 sm:$0xff]  }
 0x9ea   :  { %922 = vmatpush1.bf16.msra.mxu1 %v2579_v5  ;;  %953 = vmatprep.mubr.bf16.mxu1 %v2437_v0  ;;  %v287_v5 = vadd.f32 %v2693_v44, %v2640_v28 }
 0x9eb   :  { %923 = vmatprep.subr.bf16.mxu1 %v2583_v7 }
 0x9ee   :  { %924 = vmatpush1.bf16.msra.mxu1 %v2585_v9 }
 0x9ef   :  { %925 = vmatprep.subr.bf16.mxu1 %v2588_v12 }
 0x9f2   :  { %926 = vmatpush1.bf16.msra.mxu1 %v2591_v14 }
 0x9f3   :  { %927 = vmatprep.subr.bf16.mxu1 %v2597_v17 }
 0x9f6   :  { %928 = vmatpush1.bf16.msra.mxu1 %v2599_v19 }
 0x9f7   :  { %1218 = vmatprep.subr.bf16.mxu1 %v2794_v42 }
 0xabc   :  { %v797_v38 = vpop.f32.mrb[12].mxu1 }
 0xabd   :  { %v804_v49 = vadd.f32 %v797_v38, %v285_v37  ;;  %v799_v3 = vpop.f32.mrb[13].mxu1  ;;  %v2109_v37 = vld [vmem:[%s3058_s4 + $0x20] ss:$8 sps:$4 sm:$0xff]  }
 0xabe   :  { %v805_v7 = vadd.f32 %v799_v3, %v287_v5  ;;  %v801_v50 = vpop.f32.mrb[14].mxu1  ;;  %v2111_v5 = vld [vmem:[%s3058_s4 + $0x24] ss:$8 sps:$4 sm:$0xff]  }
 0xabf   :  { %v1968_v9 = vmul.f32 -1.442695, %v804_v49  ;;  %v802_v39 = vpop.f32.mrb[15].mxu1  ;;  %v2117_v50 = vld [vmem:[%s3058_s4 + $0x34] ss:$8 sps:$4 sm:$0xff]  }
 0xac0   :  { %v1969_v43 = vmul.f32 -1.442695, %v805_v7  ;;  %v1171_v39 = vld [vmem:[#allocation7] sm:$0xff] }
 0xac1   :  { %2181 = vpow2.f32 %v1968_v9 }
 0xac2   :  { %2183 = vtanh.f32 %v805_v7  ;;  %v2115_v7 = vld [vmem:[%s3058_s4 + $0x30] ss:$8 sps:$4 sm:$0xff]  }
 0xacb   :  { %v2182_v12 = vpop.eup %2181 }
 0xacc   :  { %v809_v14 = vadd.f32 1.0, %v2182_v12  ;;  %v2184_v17 = vpop.eup %2183  ;;  %v2828_v12 = vld [vmem:[#allocation13] ss:$8 sps:$4 sm:$0xff]  }
 0xace   :  { %2185 = vrcp.f32 %v809_v14  ;;  %v130_v14 = vld [vmem:[#allocation13 + $0x10] sm:$0xff] }
 0xacf   :  { %2187 = vpow2.f32 %v1969_v43 }
 0xad8   :  { %v2186_v19 = vpop.eup %2185 }
 0xad9   :  { %v820_v40 = vmul.f32 %v2186_v19, %v2184_v17  ;;  %v2188_v44 = vpop.eup %2187  ;;  %v819_v52 = vmul.f32 %v2186_v19, %v746_v30  ;;  %v131_v17 = vld [vmem:[#allocation13 + $0x18] sm:$0xff] }
 0xada   :  { %v816_v51 = vadd.f32 1.0, %v2188_v44  ;;  %v2830_v19 = vld [vmem:[#allocation13 + $0x14] ss:$8 sps:$4 sm:$0xff]   ;;  %v2834_v43 = vcombine.low %v130_v14, %v131_v17 }
 0xadb   :  { %822 = vrot.lane.b32.xlu1 %v820_v40, %s2439_s22 }
 0xadc   :  { %2189 = vrcp.f32 %v816_v51  ;;  %v2842_v51 = vld [vmem:[#allocation13 + $0x20] ss:$8 sps:$4 sm:$0xff]  }
 0xae6   :  { %v2190_v55 = vpop.eup %2189 }
 0xb4d   :  { %v823_v53 = vpop.permute.xlu1 %822 }
 0xb4e   :  { %v825_v54 = vadd.f32 %v823_v53, %v819_v52  ;;  %v2845_v52 = vld [vmem:[#allocation13 + $0x34] ss:$8 sps:$4 sm:$0xff]   ;;  %v2848_v53 = vld [vmem:[#allocation13 + $0x30] ss:$8 sps:$4 sm:$0xff]  }
 0xb50   :  { %2191 = vtanh.f32 %v825_v54 }
 0xb5a   :  { %v2192_v57 = vpop.eup %2191 }
 0xb5b   :  { %v2774_v59 = vmul.f32 %v2192_v57, %v2190_v55 }
 0xb5d   :  { %v835_v60 = vpack.c.bf16 %v2774_v59, %v2774_v59 }
 0xb5f   :  { %837 = vrot.lane.b32.xlu0 %v835_v60, %s2439_s22 }
 0xbd1   :  { %v838_v61 = vpop.permute.xlu0 %837 }
 0xbd2   :  { %1970 = vmatmul.mubr.msk.bf16.vlgmr.msra.gmra.mrb[24].mxu0 %vm115_vm0, %v838_v61 }
 0xbd3   :  { %1113 = vmatprep.mubr.bf16.mxu0 %v2437_v0  ;;  %1082 = vmatpush1.bf16.msra.mxu0 %v2098_v45 }
 0xbd4   :  { %1083 = vmatprep.subr.bf16.mxu0 %v2106_v36 }
 0xbd7   :  { %1084 = vmatpush1.bf16.msra.mxu0 %v2104_v34 }
 0xbd8   :  { %1085 = vmatprep.subr.bf16.mxu0 %v2111_v5 }
 0xbdb   :  { %1086 = vmatpush1.bf16.msra.mxu0 %v2109_v37 }
 0xbdc   :  { %1087 = vmatprep.subr.bf16.mxu0 %v2117_v50 }
 0xbdf   :  { %1088 = vmatpush1.bf16.msra.mxu0 %v2115_v7 }
 0xbe0   :  { %1370 = vmatprep.subr.bf16.mxu0 %v2794_v42 }
 0xca5   :  { %v876_v2 = vpop.f32.mrb[24].mxu0 }
 0xca6   :  { %v883_v4 = vadd.f32 %v876_v2, %v291_v62  ;;  %v878_v6 = vpop.f32.mrb[25].mxu0  ;;  %v295_v62 = vadd.f32 %v2699_v47, %v2636_v27 }
 0xca7   :  { %v884_v8 = vadd.f32 %v878_v6, %v293_v63  ;;  %v880_v10 = vpop.f32.mrb[26].mxu0  ;;  %v297_v63 = vadd.f32 %v2701_v48, %v2640_v28 }
 0xca8   :  { %v1971_v11 = vmul.f32 -1.442695, %v883_v4  ;;  %v881_v13 = vpop.f32.mrb[27].mxu0 }
 0xca9   :  { %v1972_v22 = vmul.f32 -1.442695, %v884_v8 }
 0xcaa   :  { %2193 = vpow2.f32 %v1971_v11 }
 0xcab   :  { %2195 = vtanh.f32 %v884_v8 }
 0xcb4   :  { %v2194_v15 = vpop.eup %2193 }
 0xcb5   :  { %v888_v16 = vadd.f32 1.0, %v2194_v15  ;;  %v2196_v20 = vpop.eup %2195  ;;  %v1017_v15 = vld [vmem:[%s3060_s6] sm:$0x3] }
 0xcb6   :  { %v2888_v27 = vrot.slane %v1017_v15, %v157_v26 }
 0xcb7   :  { %2197 = vrcp.f32 %v888_v16  ;;  %v2884_v16 = vrot.slane %v1017_v15, %v153_v24 }
 0xcb8   :  { %2199 = vpow2.f32 %v1972_v22 }
 0xcc1   :  { %v2198_v21 = vpop.eup %2197 }
 0xcc2   :  { %v899_v41 = vmul.f32 %v2198_v21, %v2196_v20  ;;  %v2200_v25 = vpop.eup %2199  ;;  %v898_v30 = vmul.f32 %v2198_v21, %v825_v54  ;;  %v1170_v54 = vld [vmem:[#allocation6] sm:$0xff] }
 0xcc3   :  { %v895_v29 = vadd.f32 1.0, %v2200_v25  ;;  %v1174_v61 = vpack.c.bf16 %v1170_v54, %v1170_v54 }
 0xcc4   :  { %901 = vrot.lane.b32.xlu1 %v899_v41, %s2439_s22 }
 0xcc5   :  { %2201 = vrcp.f32 %v895_v29 }
 0xcc8   :  { %434 = vrot.lane.b32.xlu1 %v2645_v56, %s2439_s22 }
 0xccc   :  { %1275 = vrot.lane.b32.xlu1 %v1171_v39, %s2439_s22 }
 0xccf   :  { %v2202_v38 = vpop.eup %2201 }
 0xd36   :  { %v902_v56 = vpop.permute.xlu1 %901 }
 0xd37   :  { %v2797_v31 = vadd.f32 %v902_v56, %v898_v30 }
 0xd39   :  { %2203 = vtanh.f32 %v2797_v31 }
 0xd3a   :  { %v435_v32 = vpop.permute.xlu1 %434 }
 0xd3b   :  { %437 = vst.msk [vmem:[#allocation3] sm:$0xff] %vm115_vm0, %v435_v32 }
 0xd42   :  { %v997_v55 = vld [vmem:[#allocation3] sm:$0xff] }
 0xd43   :  { %v2204_v49 = vpop.eup %2203 }
 0xd44   :  { %v2813_v3 = vmul.f32 %v2204_v49, %v2202_v38 }
 0xd46   :  { %v914_v9 = vpack.c.bf16 %v2813_v3, %v2813_v3 }
 0xd48   :  { %916 = vrot.lane.b32.xlu0 %v914_v9, %s2439_s22  ;;  %v1276_v9 = vpop.permute.xlu1 %1275 }
 0xd4c   :  { %513 = vrot.lane.b32.xlu0 %v2678_v35, %s2439_s22  ;;  %v2838_v35 = vld [vmem:[#allocation13 + $0x24] ss:$8 sps:$4 sm:$0xff]  }
 0xdba   :  { %v917_v40 = vpop.permute.xlu0 %916 }
 0xdbb   :  { %1973 = vmatmul.mubr.msk.bf16.vlgmr.msra.gmra.mrb[16].mxu1 %vm115_vm0, %v917_v40 }
 0xdbc   :  { %1219 = vmatpush1.bf16.msra.mxu1 %v2828_v12  ;;  %1250 = vmatprep.mubr.bf16.mxu1 %v2437_v0 }
 0xdbd   :  { %1220 = vmatprep.subr.bf16.mxu1 %v2830_v19 }
 0xdbe   :  { %v514_v44 = vpop.permute.xlu0 %513 }
 0xdbf   :  { %516 = vst.msk [vmem:[#allocation3 + $0x8] sm:$0xff] %vm115_vm0, %v514_v44 }
 0xdc0   :  { %1221 = vmatpush1.bf16.msra.mxu1 %v2834_v43 }
 0xdc1   :  { %1222 = vmatprep.subr.bf16.mxu1 %v2838_v35 }
 0xdc4   :  { %1223 = vmatpush1.bf16.msra.mxu1 %v2842_v51 }
 0xdc5   :  { %1224 = vmatprep.subr.bf16.mxu1 %v2845_v52 }
 0xdc6   :  { %v998_v57 = vld [vmem:[#allocation3 + $0x8] sm:$0xff] }
 0xdc7   :  { %v1005_v60 = vpack.c.bf16 %v998_v57, %v997_v55 }
 0xdc8   :  { %1225 = vmatpush1.bf16.msra.mxu1 %v2848_v53 }
 0xdc9   :  { %1984 = vmatmul.mubr.msk.bf16.vlgmr.msra.gmra.mrb[28].mxu0 %vm115_vm0, %v1005_v60  ;;  %1296 = vmatprep.subr.bf16.mxu1 %v2794_v42 }
 0xdca   :  { %1123 = vmatprep.mubr.bf16.mxu0 %v2437_v0  ;;  %1371 = vmatpush1.bf16.msra.mxu0 %v2828_v12 }
 0xdcb   :  { %1996 = vmatmul.mubr.msk.bf16.vlgmr.msra.gmra.mrb[20].mxu1 %vm115_vm0, %v1174_v61  ;;  %1372 = vmatprep.subr.bf16.mxu0 %v2830_v19 }
 0xdcc   :  { %1297 = vmatpush1.bf16.msra.mxu1 %v2828_v12  ;;  %1328 = vmatprep.mubr.bf16.mxu1 %v2437_v0 }
 0xdcd   :  { %1298 = vmatprep.subr.bf16.mxu1 %v2830_v19 }
 0xdce   :  { %1373 = vmatpush1.bf16.msra.mxu0 %v2834_v43 }
 0xdcf   :  { %1374 = vmatprep.subr.bf16.mxu0 %v2838_v35 }
 0xdd0   :  { %1299 = vmatpush1.bf16.msra.mxu1 %v2834_v43 }
 0xdd1   :  { %1300 = vmatprep.subr.bf16.mxu1 %v2838_v35 }
 0xdd2   :  { %1375 = vmatpush1.bf16.msra.mxu0 %v2842_v51 }
 0xdd3   :  { %1376 = vmatprep.subr.bf16.mxu0 %v2845_v52 }
 0xdd4   :  { %1301 = vmatpush1.bf16.msra.mxu1 %v2842_v51 }
 0xdd5   :  { %1302 = vmatprep.subr.bf16.mxu1 %v2845_v52 }
 0xdd6   :  { %1377 = vmatpush1.bf16.msra.mxu0 %v2848_v53 }
 0xdd7   :  { %1518 = vmatprep.subr.bf16.mxu0 %v2794_v42 }
 0xdd8   :  { %1303 = vmatpush1.bf16.msra.mxu1 %v2848_v53 }
 0xdd9   :  { %1444 = vmatprep.subr.bf16.mxu1 %v2794_v42 }
 0xe8e   :  { %v955_v2 = vpop.f32.mrb[16].mxu1 }
 0xe8f   :  { %v962_v4 = vadd.f32 %v955_v2, %v295_v62  ;;  %v957_v6 = vpop.f32.mrb[17].mxu1 }
 0xe90   :  { %v2877_v8 = vadd.f32 %v957_v6, %v297_v63  ;;  %v959_v10 = vpop.f32.mrb[18].mxu1 }
 0xe91   :  { %v1974_v11 = vmul.f32 -1.442695, %v962_v4  ;;  %v960_v13 = vpop.f32.mrb[19].mxu1 }
 0xe93   :  { %2205 = vpow2.f32 %v1974_v11 }
 0xe94   :  { %2207 = vtanh.f32 %v2877_v8 }
 0xe9c   :  { %v1115_v28 = vpop.f32.mrb[28].mxu0 }
 0xe9d   :  { %v2206_v47 = vpop.eup %2205  ;;  %v1116_v48 = vadd.f32 %v1115_v28, %v2884_v16  ;;  %v1117_v20 = vpop.f32.mrb[29].mxu0 }
 0xe9e   :  { %v967_v21 = vadd.f32 1.0, %v2206_v47  ;;  %v1118_v41 = vadd.f32 %v1117_v20, %v2888_v27  ;;  %v1252_v45 = vpop.f32.mrb[20].mxu1  ;;  %v1119_v46 = vpop.f32.mrb[30].mxu0  ;;  %v1975_v47 = vmul.f32 -1.442695, %v2877_v8 }
 0xe9f   :  { %v1259_v22 = vadd.f32 %v1252_v45, %v1116_v48  ;;  %v1254_v25 = vpop.f32.mrb[21].mxu1  ;;  %v1121_v24 = vpop.f32.mrb[31].mxu0 }
 0xea0   :  { %2209 = vrcp.f32 %v967_v21  ;;  %v1260_v29 = vadd.f32 %v1254_v25, %v1118_v41  ;;  %v1256_v23 = vpop.f32.mrb[22].mxu1  ;;  %v2208_v56 = vpop.eup %2207  ;;  %v1122_v2 = vadd.f32 %v1121_v24, %v2888_v27 }
 0xea1   :  { %v1997_v26 = vmul.f32 -1.442695, %v1259_v22  ;;  %v1257_v30 = vpop.f32.mrb[23].mxu1 }
 0xea2   :  { %v1998_v7 = vmul.f32 -1.442695, %v1260_v29 }
 0xea3   :  { %2211 = vpow2.f32 %v1997_v26 }
 0xea4   :  { %2213 = vtanh.f32 %v1260_v29 }
 0xeaa   :  { %v2210_v32 = vpop.eup %2209 }
 0xeab   :  { %v978_v34 = vmul.f32 %v2210_v32, %v2208_v56  ;;  %v977_v44 = vmul.f32 %v2210_v32, %v2797_v31  ;;  %v1120_v31 = vadd.f32 %v1119_v46, %v2884_v16 }
 0xead   :  { %v2212_v36 = vpop.eup %2211 }
 0xeae   :  { %v1264_v37 = vadd.f32 1.0, %v2212_v36  ;;  %v2214_v5 = vpop.eup %2213 }
 0xeb0   :  { %2215 = vrcp.f32 %v1264_v37 }
 0xeb1   :  { %2217 = vpow2.f32 %v1998_v7 }
 0xeba   :  { %v2216_v38 = vpop.eup %2215 }
 0xebb   :  { %v1279_v49 = vmul.f32 %v2216_v38, %v2214_v5  ;;  %v2218_v50 = vpop.eup %2217  ;;  %v1278_v14 = vmul.f32 %v2216_v38, %v1276_v9 }
 0xebc   :  { %v1271_v39 = vadd.f32 1.0, %v2218_v50 }
 0xebd   :  { %1281 = vrot.lane.b32.xlu0 %v1279_v49, %s2439_s22 }
 0xebe   :  { %2219 = vrcp.f32 %v1271_v39 }
 0xec1   :  { %980 = vrot.lane.b32.xlu0 %v978_v34, %s2439_s22 }
 0xec5   :  { %592 = vrot.lane.b32.xlu0 %v2716_v18, %s2439_s22 }
 0xec9   :  { %750 = vrot.lane.b32.xlu0 %v2755_v33, %s2439_s22  ;;  %v2220_v33 = vpop.eup %2219 }
 0xecd   :  { %908 = vrot.lane.b32.xlu0 %v2813_v3, %s2439_s22 }
 0xf2f   :  { %v1282_v17 = vpop.permute.xlu0 %1281 }
 0xf30   :  { %v1284_v40 = vadd.f32 %v1282_v17, %v1278_v14 }
 0xf32   :  { %2221 = vtanh.f32 %v1284_v40 }
 0xf33   :  { %v981_v54 = vpop.permute.xlu0 %980 }
 0xf34   :  { %v2902_v18 = vadd.f32 %v981_v54, %v977_v44 }
 0xf37   :  { %v593_v55 = vpop.permute.xlu0 %592 }
 0xf38   :  { %595 = vst.msk [vmem:[#allocation3 + $0x10] sm:$0xff] %vm115_vm0, %v593_v55 }
 0xf3b   :  { %v751_v3 = vpop.permute.xlu0 %750 }
 0xf3c   :  { %v2222_v57 = vpop.eup %2221  ;;  %753 = vst.msk [vmem:[#allocation3 + $0x20] sm:$0xff] %vm115_vm0, %v751_v3 }
 0xf3d   :  { %v1286_v60 = vmul.f32 %v2222_v57, %v2220_v33 }
 0xf3f   :  { %v909_v61 = vpop.permute.xlu0 %908  ;;  %v1289_v62 = vpack.c.bf16 %v1286_v60, %v1286_v60  ;;  %v999_v37 = vld [vmem:[#allocation3 + $0x10] sm:$0xff] }
 0xf40   :  { %911 = vst.msk [vmem:[#allocation3 + $0x30] sm:$0xff] %vm115_vm0, %v909_v61 }
 0xf41   :  { %1291 = vrot.lane.b32.xlu1 %v1289_v62, %s2439_s22 }
 0xf43   :  { %v1001_v39 = vld [vmem:[#allocation3 + $0x20] sm:$0xff] }
 0xfb3   :  { %v1292_v63 = vpop.permute.xlu1 %1291 }
 0xfb4   :  { %1999 = vmatmul.mubr.msk.bf16.vlgmr.msra.gmra.mrb[24].mxu1 %vm115_vm0, %v1292_v63 }
 0xfb5   :  { %1445 = vmatpush1.bf16.msra.mxu1 %v2828_v12  ;;  %1476 = vmatprep.mubr.bf16.mxu1 %v2437_v0 }
 0xfb6   :  { %1446 = vmatprep.subr.bf16.mxu1 %v2830_v19 }
 0xfb9   :  { %1447 = vmatpush1.bf16.msra.mxu1 %v2834_v43 }
 0xfba   :  { %1448 = vmatprep.subr.bf16.mxu1 %v2838_v35 }
 0xfbd   :  { %1449 = vmatpush1.bf16.msra.mxu1 %v2842_v51 }
 0xfbe   :  { %1450 = vmatprep.subr.bf16.mxu1 %v2845_v52 }
 0xfc1   :  { %1451 = vmatpush1.bf16.msra.mxu1 %v2848_v53 }
 0xfc2   :  { %1592 = vmatprep.subr.bf16.mxu1 %v2794_v42 }
0x1087   :  { %v1330_v4 = vpop.f32.mrb[24].mxu1 }
0x1088   :  { %v1337_v6 = vadd.f32 %v1330_v4, %v1120_v31  ;;  %v1332_v10 = vpop.f32.mrb[25].mxu1 }
0x1089   :  { %v1338_v11 = vadd.f32 %v1332_v10, %v1122_v2  ;;  %v1334_v13 = vpop.f32.mrb[26].mxu1 }
0x108a   :  { %v2000_v15 = vmul.f32 -1.442695, %v1337_v6  ;;  %v1335_v28 = vpop.f32.mrb[27].mxu1 }
0x108b   :  { %v2001_v29 = vmul.f32 -1.442695, %v1338_v11 }
0x108c   :  { %2223 = vpow2.f32 %v2000_v15 }
0x108d   :  { %2225 = vpow2.f32 %v1975_v47 }
0x108e   :  { %2227 = vtanh.f32 %v1338_v11 }
0x1096   :  { %v2224_v48 = vpop.eup %2223 }
0x1097   :  { %v1342_v20 = vadd.f32 1.0, %v2224_v48  ;;  %v2226_v21 = vpop.eup %2225 }
0x1098   :  { %v974_v41 = vadd.f32 1.0, %v2226_v21  ;;  %v2228_v45 = vpop.eup %2227 }
0x1099   :  { %2229 = vrcp.f32 %v1342_v20 }
0x109a   :  { %2231 = vtanh.f32 %v2902_v18 }
0x109b   :  { %2233 = vrcp.f32 %v974_v41 }
0x109c   :  { %2235 = vpow2.f32 %v2001_v29 }
0x10a3   :  { %v2230_v46 = vpop.eup %2229 }
0x10a4   :  { %v1353_v22 = vmul.f32 %v2230_v46, %v2228_v45  ;;  %v2232_v25 = vpop.eup %2231  ;;  %v1352_v30 = vmul.f32 %v2230_v46, %v1284_v40  ;;  %v1003_v40 = vld [vmem:[#allocation3 + $0x30] sm:$0xff] }
0x10a5   :  { %v2234_v8 = vpop.eup %2233 }
0x10a6   :  { %1355 = vrot.lane.b32.xlu1 %v1353_v22, %s2439_s22  ;;  %v985_v24 = vmul.f32 %v2234_v8, %v2232_v25  ;;  %v2236_v23 = vpop.eup %2235 }
0x10a7   :  { %v1349_v26 = vadd.f32 1.0, %v2236_v23 }
0x10a9   :  { %2237 = vrcp.f32 %v1349_v26 }
0x10aa   :  { %671 = vrot.lane.b32.xlu1 %v2736_v58, %s2439_s22 }
0x10ae   :  { %829 = vrot.lane.b32.xlu1 %v2774_v59, %s2439_s22 }
0x10b2   :  { %987 = vrot.lane.b32.xlu1 %v985_v24, %s2439_s22 }
0x10b3   :  { %v2238_v59 = vpop.eup %2237 }
0x1118   :  { %v1356_v56 = vpop.permute.xlu1 %1355 }
0x1119   :  { %v2928_v32 = vadd.f32 %v1356_v56, %v1352_v30 }
0x111b   :  { %2239 = vtanh.f32 %v2928_v32 }
0x111c   :  { %v672_v58 = vpop.permute.xlu1 %671 }
0x111d   :  { %674 = vst.msk [vmem:[#allocation3 + $0x18] sm:$0xff] %vm115_vm0, %v672_v58 }
0x1120   :  { %v830_v34 = vpop.permute.xlu1 %829 }
0x1121   :  { %832 = vst.msk [vmem:[#allocation3 + $0x28] sm:$0xff] %vm115_vm0, %v830_v34 }
0x1124   :  { %v988_v36 = vpop.permute.xlu1 %987  ;;  %v1000_v5 = vld [vmem:[#allocation3 + $0x18] sm:$0xff] }
0x1125   :  { %v2240_v38 = vpop.eup %2239  ;;  %990 = vst.msk [vmem:[#allocation3 + $0x38] sm:$0xff] %vm115_vm0, %v988_v36  ;;  %991 = vst.msk [vmem:[#allocation4] sm:$0xff] %vm115_vm0, %v988_v36  ;;  %v1006_v49 = vpack.c.bf16 %v1000_v5, %v999_v37 }
0x1126   :  { %v1360_v7 = vmul.f32 %v2240_v38, %v2238_v59 }
0x1127   :  { %1985 = vmatmul.mubr.msk.bf16.gmra.mrb[32].mxu0 %vm115_vm0, %v1006_v49 }
0x1128   :  { %v1363_v50 = vpack.c.bf16 %v1360_v7, %v1360_v7  ;;  %1133 = vmatprep.mubr.bf16.mxu0 %v2437_v0  ;;  %v1002_v9 = vld [vmem:[#allocation3 + $0x28] sm:$0xff] }
0x1129   :  { %v1007_v14 = vpack.c.bf16 %v1002_v9, %v1001_v39 }
0x112a   :  { %1365 = vrot.lane.b32.xlu0 %v1363_v50, %s2439_s22 }
0x112c   :  { %v1004_v17 = vld [vmem:[#allocation3 + $0x38] sm:$0xff] }
0x112d   :  { %v1008_v44 = vpack.c.bf16 %v1004_v17, %v1003_v40 }
0x112f   :  { %1986 = vmatmul.mubr.msk.bf16.gmra.mrb[36].mxu0 %vm115_vm0, %v1007_v14 }
0x1130   :  { %1143 = vmatprep.mubr.bf16.mxu0 %v2437_v0 }
0x1137   :  { %1987 = vmatmul.mubr.msk.bf16.gmra.mrb[40].mxu0 %vm115_vm0, %v1008_v44 }
0x1138   :  { %1402 = vmatprep.mubr.bf16.mxu0 %v2437_v0 }
0x119c   :  { %v1366_v54 = vpop.permute.xlu0 %1365 }
0x119d   :  { %2002 = vmatmul.mubr.msk.bf16.vlgmr.msra.gmra.mrb[44].mxu0 %vm115_vm0, %v1366_v54 }
0x119e   :  { %1519 = vmatpush1.bf16.msra.mxu0 %v2828_v12  ;;  %1550 = vmatprep.mubr.bf16.mxu0 %v2437_v0 }
0x119f   :  { %1520 = vmatprep.subr.bf16.mxu0 %v2830_v19 }
0x11a2   :  { %1521 = vmatpush1.bf16.msra.mxu0 %v2834_v43 }
0x11a3   :  { %1522 = vmatprep.subr.bf16.mxu0 %v2838_v35 }
0x11a6   :  { %1523 = vmatpush1.bf16.msra.mxu0 %v2842_v51 }
0x11a7   :  { %1524 = vmatprep.subr.bf16.mxu0 %v2845_v52 }
0x11aa   :  { %1525 = vmatpush1.bf16.msra.mxu0 %v2848_v53 }
0x11ab   :  { %1666 = vmatprep.subr.bf16.mxu0 %v2794_v42 }
0x11fa   :  { %v1125_v55 = vpop.f32.mrb[32].mxu0 }
0x11fb   :  { %v1127_v33 = vpop.f32.mrb[33].mxu0  ;;  %v1126_v10 = vadd.f32 %v1125_v55, %v2884_v16 }
0x11fc   :  { %v1129_v3 = vpop.f32.mrb[34].mxu0  ;;  %v1128_v11 = vadd.f32 %v1127_v33, %v2888_v27 }
0x11fd   :  { %v1131_v57 = vpop.f32.mrb[35].mxu0 }
0x11fe   :  { %v1132_v37 = vadd.f32 %v1131_v57, %v2888_v27 }
0x1202   :  { %v2952_v60 = vpop.f32.mrb[36].mxu0 }
0x1203   :  { %v2954_v61 = vpop.f32.mrb[37].mxu0 }
0x1204   :  { %v2956_v62 = vpop.f32.mrb[38].mxu0 }
0x1205   :  { %v2958_v63 = vpop.f32.mrb[39].mxu0 }
0x120a   :  { %v2960_v31 = vpop.f32.mrb[40].mxu0 }
0x120b   :  { %v2962_v2 = vpop.f32.mrb[41].mxu0 }
0x120c   :  { %v2964_v4 = vpop.f32.mrb[42].mxu0 }
0x120d   :  { %v2966_v6 = vpop.f32.mrb[43].mxu0 }
0x1270   :  { %v1404_v13 = vpop.f32.mrb[44].mxu0 }
0x1271   :  { %v1411_v15 = vadd.f32 %v1404_v13, %v1126_v10  ;;  %v1406_v28 = vpop.f32.mrb[45].mxu0 }
0x1272   :  { %v1412_v47 = vadd.f32 %v1406_v28, %v1128_v11  ;;  %v1408_v48 = vpop.f32.mrb[46].mxu0 }
0x1273   :  { %v2003_v20 = vmul.f32 -1.442695, %v1411_v15  ;;  %v1409_v21 = vpop.f32.mrb[47].mxu0  ;;  %v1136_v48 = vadd.f32 %v2952_v60, %v2884_v16 }
0x1274   :  { %v2004_v8 = vmul.f32 -1.442695, %v1412_v47 }
0x1275   :  { %2241 = vpow2.f32 %v2003_v20  ;;  %v1138_v20 = vadd.f32 %v2954_v61, %v2888_v27 }
0x1276   :  { %2243 = vtanh.f32 %v1412_v47 }
0x127f   :  { %v2242_v41 = vpop.eup %2241 }
0x1280   :  { %v1416_v45 = vadd.f32 1.0, %v2242_v41  ;;  %v2244_v46 = vpop.eup %2243 }
0x1282   :  { %2245 = vrcp.f32 %v1416_v45 }
0x1283   :  { %2247 = vpow2.f32 %v2004_v8 }
0x128c   :  { %v2246_v22 = vpop.eup %2245 }
0x128d   :  { %v1427_v25 = vmul.f32 %v2246_v22, %v2244_v46  ;;  %v2248_v24 = vpop.eup %2247  ;;  %v1426_v23 = vmul.f32 %v2246_v22, %v2928_v32  ;;  %v1130_v32 = vadd.f32 %v1129_v3, %v2884_v16 }
0x128e   :  { %v1423_v29 = vadd.f32 1.0, %v2248_v24 }
0x128f   :  { %1429 = vrot.lane.b32.xlu1 %v1427_v25, %s2439_s22 }
0x1290   :  { %2249 = vrcp.f32 %v1423_v29 }
0x129a   :  { %v2250_v56 = vpop.eup %2249 }
0x1301   :  { %v1430_v26 = vpop.permute.xlu1 %1429 }
0x1302   :  { %v1432_v30 = vadd.f32 %v1430_v26, %v1426_v23 }
0x1304   :  { %2251 = vtanh.f32 %v1432_v30 }
0x130e   :  { %v2252_v58 = vpop.eup %2251 }
0x130f   :  { %v1434_v34 = vmul.f32 %v2252_v58, %v2250_v56 }
0x1311   :  { %v1437_v59 = vpack.c.bf16 %v1434_v34, %v1434_v34 }
0x1313   :  { %1439 = vrot.lane.b32.xlu0 %v1437_v59, %s2439_s22 }
0x1385   :  { %v1440_v36 = vpop.permute.xlu0 %1439 }
0x1386   :  { %2005 = vmatmul.mubr.msk.bf16.vlgmr.msra.gmra.mrb[28].mxu1 %vm115_vm0, %v1440_v36 }
0x1387   :  { %1593 = vmatpush1.bf16.msra.mxu1 %v2828_v12  ;;  %1624 = vmatprep.mubr.bf16.mxu1 %v2437_v0 }
0x1388   :  { %1594 = vmatprep.subr.bf16.mxu1 %v2830_v19 }
0x138b   :  { %1595 = vmatpush1.bf16.msra.mxu1 %v2834_v43 }
0x138c   :  { %1596 = vmatprep.subr.bf16.mxu1 %v2838_v35 }
0x138f   :  { %1597 = vmatpush1.bf16.msra.mxu1 %v2842_v51 }
0x1390   :  { %1598 = vmatprep.subr.bf16.mxu1 %v2845_v52 }
0x1393   :  { %1599 = vmatpush1.bf16.msra.mxu1 %v2848_v53 }
0x1394   :  { %1740 = vmatprep.subr.bf16.mxu1 %v2794_v42 }
0x1459   :  { %v1478_v5 = vpop.f32.mrb[28].mxu1 }
0x145a   :  { %v1485_v38 = vadd.f32 %v1478_v5, %v1130_v32  ;;  %v1480_v49 = vpop.f32.mrb[29].mxu1 }
0x145b   :  { %v1486_v7 = vadd.f32 %v1480_v49, %v1132_v37  ;;  %v1482_v50 = vpop.f32.mrb[30].mxu1  ;;  %v1140_v49 = vadd.f32 %v2956_v62, %v2884_v16 }
0x145c   :  { %v2006_v9 = vmul.f32 -1.442695, %v1485_v38  ;;  %v1483_v39 = vpop.f32.mrb[31].mxu1 }
0x145d   :  { %v2007_v42 = vmul.f32 -1.442695, %v1486_v7 }
0x145e   :  { %2253 = vpow2.f32 %v2006_v9 }
0x145f   :  { %2255 = vtanh.f32 %v1486_v7 }
0x1468   :  { %v2254_v14 = vpop.eup %2253 }
0x1469   :  { %v1490_v17 = vadd.f32 1.0, %v2254_v14  ;;  %v2256_v40 = vpop.eup %2255 }
0x146b   :  { %2257 = vrcp.f32 %v1490_v17 }
0x146c   :  { %2259 = vpow2.f32 %v2007_v42 }
0x1475   :  { %v2258_v44 = vpop.eup %2257 }
0x1476   :  { %v1501_v54 = vmul.f32 %v2258_v44, %v2256_v40  ;;  %v2260_v55 = vpop.eup %2259  ;;  %v1500_v3 = vmul.f32 %v2258_v44, %v1432_v30 }
0x1477   :  { %v1497_v33 = vadd.f32 1.0, %v2260_v55 }
0x1478   :  { %1503 = vrot.lane.b32.xlu1 %v1501_v54, %s2439_s22 }
0x1479   :  { %2261 = vrcp.f32 %v1497_v33 }
0x1483   :  { %v2262_v11 = vpop.eup %2261 }
0x14ea   :  { %v1504_v57 = vpop.permute.xlu1 %1503 }
0x14eb   :  { %v1506_v10 = vadd.f32 %v1504_v57, %v1500_v3 }
0x14ed   :  { %2263 = vtanh.f32 %v1506_v10 }
0x14f7   :  { %v2264_v13 = vpop.eup %2263 }
0x14f8   :  { %v1508_v15 = vmul.f32 %v2264_v13, %v2262_v11  ;;  %v1148_v11 = vadd.f32 %v2962_v2, %v2888_v27 }
0x14fa   :  { %v1511_v28 = vpack.c.bf16 %v1508_v15, %v1508_v15 }
0x14fc   :  { %1513 = vrot.lane.b32.xlu0 %v1511_v28, %s2439_s22 }
0x156e   :  { %v1514_v47 = vpop.permute.xlu0 %1513 }
0x156f   :  { %2008 = vmatmul.mubr.msk.bf16.vlgmr.msra.gmra.mrb[48].mxu0 %vm115_vm0, %v1514_v47 }
0x1570   :  { %1667 = vmatpush1.bf16.msra.mxu0 %v2828_v12  ;;  %1698 = vmatprep.mubr.bf16.mxu0 %v2437_v0 }
0x1571   :  { %1668 = vmatprep.subr.bf16.mxu0 %v2830_v19 }
0x1574   :  { %1669 = vmatpush1.bf16.msra.mxu0 %v2834_v43 }
0x1575   :  { %1670 = vmatprep.subr.bf16.mxu0 %v2838_v35 }
0x1578   :  { %1671 = vmatpush1.bf16.msra.mxu0 %v2842_v51 }
0x1579   :  { %1672 = vmatprep.subr.bf16.mxu0 %v2845_v52 }
0x157c   :  { %1673 = vmatpush1.bf16.msra.mxu0 %v2848_v53 }
0x1642   :  { %v1552_v21 = vpop.f32.mrb[48].mxu0 }
0x1643   :  { %v1559_v41 = vadd.f32 %v1552_v21, %v1136_v48  ;;  %v1554_v45 = vpop.f32.mrb[49].mxu0 }
0x1644   :  { %v1560_v46 = vadd.f32 %v1554_v45, %v1138_v20  ;;  %v1556_v22 = vpop.f32.mrb[50].mxu0 }
0x1645   :  { %v2009_v25 = vmul.f32 -1.442695, %v1559_v41  ;;  %v1557_v8 = vpop.f32.mrb[51].mxu0 }
0x1646   :  { %v2010_v60 = vmul.f32 -1.442695, %v1560_v46 }
0x1647   :  { %2265 = vpow2.f32 %v2009_v25 }
0x1648   :  { %2267 = vtanh.f32 %v1560_v46 }
0x1651   :  { %v2266_v24 = vpop.eup %2265 }
0x1652   :  { %v1564_v29 = vadd.f32 1.0, %v2266_v24  ;;  %v2268_v23 = vpop.eup %2267 }
0x1654   :  { %2269 = vrcp.f32 %v1564_v29 }
0x1655   :  { %2271 = vpow2.f32 %v2010_v60 }
0x165e   :  { %v2270_v26 = vpop.eup %2269 }
0x165f   :  { %v1575_v30 = vmul.f32 %v2270_v26, %v2268_v23  ;;  %v2272_v61 = vpop.eup %2271  ;;  %v1574_v58 = vmul.f32 %v2270_v26, %v1506_v10  ;;  %v1146_v10 = vadd.f32 %v2960_v31, %v2884_v16 }
0x1660   :  { %v1571_v56 = vadd.f32 1.0, %v2272_v61 }
0x1661   :  { %1577 = vrot.lane.b32.xlu1 %v1575_v30, %s2439_s22 }
0x1662   :  { %2273 = vrcp.f32 %v1571_v56 }
0x166c   :  { %v2274_v36 = vpop.eup %2273 }
0x16d3   :  { %v1578_v34 = vpop.permute.xlu1 %1577 }
0x16d4   :  { %v1580_v59 = vadd.f32 %v1578_v34, %v1574_v58  ;;  %v1150_v58 = vadd.f32 %v2964_v4, %v2884_v16  ;;  %v1152_v34 = vadd.f32 %v2966_v6, %v2888_v27  ;;  %v1818_v16 = vld [vmem:[#allocation14] sm:$0xff]  ;;  %v1820_v4 = vld [vmem:[#allocation14 + $0x10] sm:$0xff]  ;;  %v2440_v6 = vmov 0.0|0.0  }
0x16d5   :  { %2050 = vmatprep.subr.bf16.mxu0 %v2440_v6 }
0x16d6   :  { %2275 = vtanh.f32 %v1580_v59 }
0x16e0   :  { %v2276_v32 = vpop.eup %2275 }
0x16e1   :  { %v1582_v37 = vmul.f32 %v2276_v32, %v2274_v36 }
0x16e3   :  { %v1585_v5 = vpack.c.bf16 %v1582_v37, %v1582_v37 }
0x16e5   :  { %1587 = vrot.lane.b32.xlu0 %v1585_v5, %s2439_s22 }
0x1757   :  { %v1588_v38 = vpop.permute.xlu0 %1587 }
0x1758   :  { %2011 = vmatmul.mubr.msk.bf16.vlgmr.msra.gmra.mrb[32].mxu1 %vm115_vm0, %v1588_v38 }
0x1759   :  { %1741 = vmatpush1.bf16.msra.mxu1 %v2828_v12  ;;  %1772 = vmatprep.mubr.bf16.mxu1 %v2437_v0  ;;  %v1142_v12 = vadd.f32 %v2958_v63, %v2888_v27  ;;  %v1819_v27 = vld [vmem:[#allocation14 + $0x8] sm:$0xff] }
0x175a   :  { %1742 = vmatprep.subr.bf16.mxu1 %v2830_v19 }
0x175d   :  { %1743 = vmatpush1.bf16.msra.mxu1 %v2834_v43 }
0x175e   :  { %1744 = vmatprep.subr.bf16.mxu1 %v2838_v35 }
0x1761   :  { %1745 = vmatpush1.bf16.msra.mxu1 %v2842_v51 }
0x1762   :  { %1746 = vmatprep.subr.bf16.mxu1 %v2845_v52 }
0x1765   :  { %1747 = vmatpush1.bf16.msra.mxu1 %v2848_v53 }
0x182b   :  { %v1626_v7 = vpop.f32.mrb[32].mxu1 }
0x182c   :  { %v1633_v0 = vadd.f32 %v1626_v7, %v1140_v49  ;;  %v1628_v50 = vpop.f32.mrb[33].mxu1 }
0x182d   :  { %v1634_v19 = vadd.f32 %v1628_v50, %v1142_v12  ;;  %v1630_v9 = vpop.f32.mrb[34].mxu1 }
0x182e   :  { %v2012_v43 = vmul.f32 -1.442695, %v1633_v0  ;;  %v1631_v39 = vpop.f32.mrb[35].mxu1  ;;  %v2051_v9 = vpack.c.bf16 %v1819_v27, %v1818_v16 }
0x182f   :  { %v2013_v62 = vmul.f32 -1.442695, %v1634_v19 }
0x1830   :  { %2277 = vpow2.f32 %v2012_v43  ;;  %v1821_v43 = vld [vmem:[#allocation14 + $0x18] sm:$0xff] }
0x1831   :  { %2279 = vtanh.f32 %v1634_v19  ;;  %v2054_v39 = vpack.c.bf16 %v1821_v43, %v1820_v4 }
0x183a   :  { %v2278_v35 = vpop.eup %2277 }
0x183b   :  { %v1638_v51 = vadd.f32 1.0, %v2278_v35  ;;  %v2280_v52 = vpop.eup %2279  ;;  %v1822_v35 = vld [vmem:[#allocation14 + $0x20] sm:$0xff] }
0x183d   :  { %2281 = vrcp.f32 %v1638_v51  ;;  %v1823_v51 = vld [vmem:[#allocation14 + $0x28] sm:$0xff] }
0x183e   :  { %2283 = vpow2.f32 %v2013_v62 }
0x1847   :  { %v2282_v53 = vpop.eup %2281 }
0x1848   :  { %v1649_v14 = vmul.f32 %v2282_v53, %v2280_v52  ;;  %v2284_v63 = vpop.eup %2283  ;;  %v1648_v40 = vmul.f32 %v2282_v53, %v1580_v59  ;;  %v2057_v52 = vpack.c.bf16 %v1823_v51, %v1822_v35  ;;  %v1824_v53 = vld [vmem:[#allocation14 + $0x30] sm:$0xff] }
0x1849   :  { %v1645_v17 = vadd.f32 1.0, %v2284_v63 }
0x184a   :  { %1651 = vrot.lane.b32.xlu1 %v1649_v14, %s2439_s22 }
0x184b   :  { %2285 = vrcp.f32 %v1645_v17 }
0x1855   :  { %v2286_v42 = vpop.eup %2285 }
0x18bc   :  { %v1652_v44 = vpop.permute.xlu1 %1651 }
0x18bd   :  { %v1654_v54 = vadd.f32 %v1652_v44, %v1648_v40 }
0x18bf   :  { %2287 = vtanh.f32 %v1654_v54 }
0x18c9   :  { %v2288_v55 = vpop.eup %2287 }
0x18ca   :  { %v1656_v33 = vmul.f32 %v2288_v55, %v2286_v42 }
0x18cc   :  { %v1659_v3 = vpack.c.bf16 %v1656_v33, %v1656_v33 }
0x18ce   :  { %1661 = vrot.lane.b32.xlu0 %v1659_v3, %s2439_s22 }
0x1940   :  { %v1662_v57 = vpop.permute.xlu0 %1661 }
0x1941   :  { %2014 = vmatmul.mubr.msk.bf16.vlgmr.msra.gmra.mrb[52].mxu0 %vm115_vm0, %v1662_v57 }
0x1942   :  { %2047 = vmatprep.mubr.msk.f32.mxu0 %vm2441_vm3, %v2438_v1  ;;  %2052 = vmatpush3.bf16.msra.mxu0 %v2051_v9 }
0x1943   :  { %2053 = vmatprep.subr.bf16.mxu0 %v2440_v6 }
0x1946   :  { %2055 = vmatpush3.bf16.msra.mxu0 %v2054_v39 }
0x1947   :  { %2056 = vmatprep.subr.bf16.mxu0 %v2440_v6 }
0x194a   :  { %2058 = vmatpush3.bf16.msra.mxu0 %v2057_v52 }
0x194b   :  { %2059 = vmatprep.subr.bf16.mxu0 %v2440_v6 }
0x1a14   :  { %v1700_v13 = vpop.f32.mrb[52].mxu0 }
0x1a15   :  { %v1707_v15 = vadd.f32 %v1700_v13, %v1146_v10  ;;  %v1702_v28 = vpop.f32.mrb[53].mxu0  ;;  %v2020_v10 = vld [vmem:[%s3062_s8] ss:$0 sm:$0xff] }
0x1a16   :  { %v1708_v47 = vadd.f32 %v1702_v28, %v1148_v11  ;;  %v1704_v48 = vpop.f32.mrb[54].mxu0 }
0x1a17   :  { %v2015_v20 = vmul.f32 -1.442695, %v1707_v15  ;;  %v1705_v21 = vpop.f32.mrb[55].mxu0 }
0x1a18   :  { %v2016_v31 = vmul.f32 -1.442695, %v1708_v47 }
0x1a19   :  { %2289 = vpow2.f32 %v2015_v20 }
0x1a1a   :  { %2291 = vtanh.f32 %v1708_v47 }
0x1a23   :  { %v2290_v41 = vpop.eup %2289 }
0x1a24   :  { %v1712_v45 = vadd.f32 1.0, %v2290_v41  ;;  %v2292_v46 = vpop.eup %2291 }
0x1a26   :  { %2293 = vrcp.f32 %v1712_v45 }
0x1a27   :  { %2295 = vpow2.f32 %v2016_v31 }
0x1a30   :  { %v2294_v22 = vpop.eup %2293 }
0x1a31   :  { %v1723_v25 = vmul.f32 %v2294_v22, %v2292_v46  ;;  %v2296_v2 = vpop.eup %2295  ;;  %v1722_v24 = vmul.f32 %v2294_v22, %v1654_v54 }
0x1a32   :  { %v1719_v8 = vadd.f32 1.0, %v2296_v2 }
0x1a33   :  { %1725 = vrot.lane.b32.xlu1 %v1723_v25, %s2439_s22 }
0x1a34   :  { %2297 = vrcp.f32 %v1719_v8 }
0x1a3e   :  { %v2298_v26 = vpop.eup %2297 }
0x1aa5   :  { %v1726_v29 = vpop.permute.xlu1 %1725 }
0x1aa6   :  { %v1728_v23 = vadd.f32 %v1726_v29, %v1722_v24 }
0x1aa8   :  { %2299 = vtanh.f32 %v1728_v23 }
0x1ab2   :  { %v2300_v30 = vpop.eup %2299 }
0x1ab3   :  { %v1730_v60 = vmul.f32 %v2300_v30, %v2298_v26 }
0x1ab5   :  { %v1733_v61 = vpack.c.bf16 %v1730_v60, %v1730_v60 }
0x1ab7   :  { %1735 = vrot.lane.b32.xlu0 %v1733_v61, %s2439_s22 }
0x1b29   :  { %v1736_v56 = vpop.permute.xlu0 %1735 }
0x1b2a   :  { %2017 = vmatmul.mubr.msk.bf16.vlgmr.msra.gmra.mrb[36].mxu1 %vm115_vm0, %v1736_v56 }
0x1bfd   :  { %v1774_v59 = vpop.f32.mrb[36].mxu1 }
0x1bfe   :  { %v1781_v36 = vadd.f32 %v1774_v59, %v1150_v58  ;;  %v1776_v32 = vpop.f32.mrb[37].mxu1 }
0x1bff   :  { %v1782_v37 = vadd.f32 %v1776_v32, %v1152_v34  ;;  %v1778_v5 = vpop.f32.mrb[38].mxu1 }
0x1c00   :  { %v2018_v38 = vmul.f32 -1.442695, %v1781_v36  ;;  %v1779_v49 = vpop.f32.mrb[39].mxu1 }
0x1c01   :  { %v2019_v62 = vmul.f32 -1.442695, %v1782_v37 }
0x1c02   :  { %2301 = vpow2.f32 %v2018_v38 }
0x1c03   :  { %2303 = vtanh.f32 %v1782_v37 }
0x1c0c   :  { %v2302_v12 = vpop.eup %2301 }
0x1c0d   :  { %v1786_v7 = vadd.f32 1.0, %v2302_v12  ;;  %v2304_v0 = vpop.eup %2303 }
0x1c0f   :  { %2305 = vrcp.f32 %v1786_v7 }
0x1c10   :  { %2307 = vpow2.f32 %v2019_v62 }
0x1c19   :  { %v2306_v50 = vpop.eup %2305 }
0x1c1a   :  { %v1797_v19 = vmul.f32 %v2306_v50, %v2304_v0  ;;  %v2308_v63 = vpop.eup %2307  ;;  %v1796_v40 = vmul.f32 %v2306_v50, %v1728_v23 }
0x1c1b   :  { %v1793_v17 = vadd.f32 1.0, %v2308_v63 }
0x1c1c   :  { %1799 = vrot.lane.b32.xlu1 %v1797_v19, %s2439_s22 }
0x1c1d   :  { %2309 = vrcp.f32 %v1793_v17 }
0x1c20   :  { %993 = vrot.lane.b32.xlu1 %v2902_v18, %s2439_s22  ;;  %v1825_v18 = vld [vmem:[#allocation14 + $0x38] sm:$0xff] }
0x1c21   :  { %v2060_v14 = vpack.c.bf16 %v1825_v18, %v1824_v53 }
0x1c23   :  { %2061 = vmatpush3.bf16.msra.mxu0 %v2060_v14 }
0x1c27   :  { %v2310_v42 = vpop.eup %2309 }
0x1c8e   :  { %v1800_v1 = vpop.permute.xlu1 %1799 }
0x1c8f   :  { %v1802_v44 = vadd.f32 %v1800_v1, %v1796_v40 }
0x1c91   :  { %2311 = vtanh.f32 %v1802_v44 }
0x1c92   :  { %v994_v54 = vpop.permute.xlu1 %993 }
0x1c93   :  { %996 = vst.msk [vmem:[#allocation5] sm:$0xff] %vm115_vm0, %v994_v54 }
0x1c9b   :  { %v2312_v55 = vpop.eup %2311 }
0x1c9c   :  { %v1804_v33 = vmul.f32 %v2312_v55, %v2310_v42 }
0x1c9e   :  { %1806 = vrot.lane.b32.xlu0 %v1804_v33, %s2439_s22 }
0x1ca2   :  { %1811 = vrot.lane.b32.xlu0 %v1802_v44, %s2439_s22  ;;  %s2401_s22 = scalar_lea.vmem %s1913_s17, 128 }
0x1ca3   :  { %p2402_p4 = scmp.ne.s32.totalorder %s1913_s17, %s2401_s22  ;;  %p2407_p6 = scmp.lt.s32.totalorder %s2401_s22, %s2401_s22 }
0x1ca5   :  { %p2408_p7 = por %p2407_p6, %p2406_p5 }
0x1ca7   :  { %p2409_p8 = pnand %p2408_p7, %p2402_p4 }
0x1d10   :  { %v1807_v3 = vpop.permute.xlu0 %1806 }
0x1d11   :  { %1809 = vst.msk [vmem:[#allocation6] sm:$0xff] %vm115_vm0, %v1807_v3  ;;  %2048 = vmatmul.mubr.msk.f32.vlgmr.msra.gmra.mrb[56].mxu0 %vm115_vm0, %v1807_v3 }
0x1d14   :  { %v1812_v57 = vpop.permute.xlu0 %1811 }
0x1d15   :  { %1814 = vst.msk [vmem:[#allocation7] sm:$0xff] %vm115_vm0, %v1812_v57 }
0x1de4   :  { %v1901_v11 = vpop.f32.mrb[56].mxu0 }
0x1de5   :  { %v1902_v13 = vadd.f32 %v2020_v10, %v1901_v11  ;;  %v2049_v15 = vpop.f32.mrb[57].mxu0 }
0x1de7   :  { %1905 = vst [vmem:[#allocation16] sm:$0xff] %v1902_v13 }
0x1de8   :  { %2412 = shalt.err (!%p2409_p8)
}
0x1de9   :  { %s2413_s19 = scalar_lea.hbm %s3063_s9, 128 }
0x1dea   :  { %p2414_p9 = scmp.ne.s32.totalorder %s3063_s9, %s2413_s19  ;;  %p2417_p10 = scmp.lt.u32.totalorder %s2413_s19, %s3063_s9 }
0x1dec   :  { %p2419_p11 = pnand %p2417_p10, %p2414_p9 }
0x1dee   :  { %2422 = shalt.err (!%p2419_p11)
}
0x1def   :  { %1915 = dma.vmem_to_hbm [thread:$0]  %s1913_s17, 128, %s3063_s9, [#allocation10]  }
0x1df0   :  { %2429 = dma.done.wait [#allocation10], 128  }
0x1df1   :  { %2430 = vsyncadd [#allocation10], 4294967168 }
0x1df2   :  { %1919 = vsyncpa [#allocation9], 1 }
0x1df3   :  { %1920 = vsyncpa [#allocation12], 1 }
0x1df4   :  { %1921 = vsyncpa [#allocation15], 1 }
0x1df5   :  { %1922 = vsyncpa [#allocation10], 1 }

</bundles_post_ra>
